<compile_context>
chip_gen: v6e
topology: v6e:2x2x1
jax: 0.10.0
libtpu: 0.0.40
codegen_flags: <defaults>
</compile_context>

<pallas_src>
import jax
import jax.numpy as jnp
from jax import lax
from jax.experimental import pallas as pl
from jax.experimental.pallas import tpu as pltpu

KSIZE = 3
NEG_SLOPE = 0.1
LANE = 128


def _scaled_pred_kernel(x_ref, w1_ref, s1_ref, b1_ref, w2_ref, s2_ref, b2_ref, o_ref):
    """One block of NB batch elements per grid step.

    x_ref : (NB, H, W, Cin)      bf16 NHWC input (unpadded)
    w1_ref: (9*Cin, C1)          bf16 im2col-flattened 3x3 conv weights
    s1_ref/b1_ref: (1, C1)       f32 folded BN1 scale / bias
    w2_ref: (C1, C2p)            bf16 1x1 conv weights, lane-padded to 128
    s2_ref/b2_ref: (1, C2p)      f32 folded BN2 scale / bias (lane-padded)
    o_ref : (NB*H*W, C2p)        f32 lane-dense output slab
    """
    NB, H, W, Cin = x_ref.shape

    # --- build the 1-pixel zero halo in VMEM (no extra HBM round trip) ---
    x = x_ref[...].astype(jnp.float32)                       # (NB, H, W, Cin)
    zrow = jnp.zeros((NB, 1, W, Cin), jnp.float32)
    xp = jnp.concatenate([zrow, x, zrow], axis=1)            # (NB, H+2, W, Cin)
    zcol = jnp.zeros((NB, H + 2, 1, Cin), jnp.float32)
    xp = jnp.concatenate([zcol, xp, zcol], axis=2)           # (NB, H+2, W+2, Cin)

    # --- im2col: 9 shifted taps concatenated along channels -> a single matmul ---
    cols = []
    for dy in range(KSIZE):
        for dx in range(KSIZE):
            cols.append(xp[:, dy:dy + H, dx:dx + W, :])
    patches = jnp.concatenate(cols, axis=-1)                 # (NB, H, W, 9*Cin)
    patches = patches.reshape(NB * H * W, KSIZE * KSIZE * Cin)

    # --- ConvBlock 1: one MXU matmul (bf16 in, f32 acc) + folded BN + LeakyReLU ---
    h1 = jnp.dot(patches.astype(jnp.bfloat16), w1_ref[...],
                 preferred_element_type=jnp.float32)         # (NB*H*W, C1) f32
    h1 = h1 * s1_ref[...] + b1_ref[...]
    h1 = jnp.where(h1 > 0, h1, NEG_SLOPE * h1)

    # --- ConvBlock 2: 1x1 conv == plain matmul over channels ---
    h2 = jnp.dot(h1.astype(jnp.bfloat16), w2_ref[...],
                 preferred_element_type=jnp.float32)         # (NB*H*W, C2p) f32
    h2 = h2 * s2_ref[...] + b2_ref[...]
    h2 = jnp.where(h2 > 0, h2, NEG_SLOPE * h2)

    # Lane-dense store: last dim is a full 128-lane multiple -> unmasked vst.
    o_ref[...] = h2.astype(o_ref.dtype)


def scaled_prediction(x_nchw, w1_hwio, s1, b1, w2, s2, b2, num_classes):
    """x_nchw: (N, Cin, H, W) float32. Returns (N, 3, H, W, 5+num_classes) float32."""
    N, Cin, H, W = x_nchw.shape
    C1 = w1_hwio.shape[3]
    C2 = w2.shape[1]
    assert C2 == 3 * (5 + num_classes)
    C2p = ((C2 + LANE - 1) // LANE) * LANE                   # 75 -> 128

    # Batch elements per grid step: big enough to amortize the ~0.35us/step overhead,
    # but at least two grid steps when N allows so v7x's 2 TensorCores both get work.
    if N >= 2 and N % 2 == 0:
        NB = N // 2
    else:
        NB = N
    grid_n = N // NB
    rows_per_step = NB * H * W

    # Glue: NCHW -> NHWC (channels on the lane axis); bf16 feeds the MXU at full rate
    # and halves the activation DMA bytes. No spatial padding here (done in VMEM).
    x_nhwc = jnp.transpose(x_nchw, (0, 2, 3, 1)).astype(jnp.bfloat16)

    # 3x3 conv weights flattened for the im2col matmul: (kh, kw, cin, cout) -> (9*Cin, C1).
    w1_flat = w1_hwio.reshape(KSIZE * KSIZE * Cin, C1).astype(jnp.bfloat16)

    # 1x1 conv weights / BN2 params lane-padded to the dense 128-wide output slab.
    w2_p = jnp.zeros((C1, C2p), jnp.bfloat16).at[:, :C2].set(w2.astype(jnp.bfloat16))
    s2_p = jnp.zeros((1, C2p), jnp.float32).at[0, :C2].set(s2.astype(jnp.float32))
    b2_p = jnp.zeros((1, C2p), jnp.float32).at[0, :C2].set(b2.astype(jnp.float32))
    s1_2d = s1.reshape(1, C1).astype(jnp.float32)
    b1_2d = b1.reshape(1, C1).astype(jnp.float32)

    out_flat = pl.pallas_call(
        _scaled_pred_kernel,
        out_shape=jax.ShapeDtypeStruct((N * H * W, C2p), jnp.float32),
        grid_spec=pltpu.PrefetchScalarGridSpec(
            num_scalar_prefetch=0,
            grid=(grid_n,),
            in_specs=[
                pl.BlockSpec((NB, H, W, Cin), lambda n: (n, 0, 0, 0)),
                pl.BlockSpec((KSIZE * KSIZE * Cin, C1), lambda n: (0, 0)),
                pl.BlockSpec((1, C1), lambda n: (0, 0)),
                pl.BlockSpec((1, C1), lambda n: (0, 0)),
                pl.BlockSpec((C1, C2p), lambda n: (0, 0)),
                pl.BlockSpec((1, C2p), lambda n: (0, 0)),
                pl.BlockSpec((1, C2p), lambda n: (0, 0)),
            ],
            out_specs=pl.BlockSpec((rows_per_step, C2p), lambda n: (n, 0)),
        ),
        compiler_params=pltpu.CompilerParams(
            dimension_semantics=("parallel",),
            vmem_limit_bytes=32 * 1024 * 1024,
        ),
    )(x_nhwc, w1_flat, s1_2d, b1_2d, w2_p, s2_p, b2_p)

    # Glue: drop the lane padding, restore NCHW, then the exact PyTorch raw reshape.
    out_nhwc = out_flat[:, :C2].reshape(N, H, W, C2)
    out_nchw = jnp.transpose(out_nhwc, (0, 3, 1, 2))
    return out_nchw.reshape(N, 3, H, W, 5 + num_classes)


def _ref_scaled_prediction(x_nchw, w1_hwio, s1, b1, w2, s2, b2, num_classes):
    """Pure-JAX reference with the same bf16 quantization points as the kernel."""
    N, Cin, H, W = x_nchw.shape
    xn = jnp.transpose(x_nchw, (0, 2, 3, 1)).astype(jnp.bfloat16).astype(jnp.float32)
    w1q = w1_hwio.astype(jnp.bfloat16).astype(jnp.float32)
    w2q = w2.astype(jnp.bfloat16).astype(jnp.float32)
    y1 = lax.conv_general_dilated(
        xn, w1q, window_strides=(1, 1), padding="SAME",
        dimension_numbers=("NHWC", "HWIO", "NHWC"),
        precision=lax.Precision.HIGHEST)
    y1 = y1 * s1 + b1
    y1 = jnp.where(y1 > 0, y1, NEG_SLOPE * y1)
    y1 = y1.astype(jnp.bfloat16).astype(jnp.float32)
    y2 = jnp.einsum("nhwc,cd->nhwd", y1, w2q, precision=lax.Precision.HIGHEST)
    y2 = y2 * s2 + b2
    y2 = jnp.where(y2 > 0, y2, NEG_SLOPE * y2)
    y = jnp.transpose(y2, (0, 3, 1, 2))
    return y.reshape(N, 3, H, W, 5 + num_classes)


def _fold_bn(gamma, beta, mean, var, eps=1e-5):
    scale = gamma / jnp.sqrt(var + eps)
    bias = beta - mean * scale
    return scale, bias


if __name__ == "__main__":
    # Small deterministic setup: batch=2, in_channels=4, spatial=16x16, num_classes=20.
    N, Cin, H, W = 2, 4, 16, 16
    num_classes = 20
    C1 = 2 * Cin                    # first ConvBlock output channels
    C2 = 3 * (5 + num_classes)      # = 75

    key = jax.random.PRNGKey(0)
    keys = jax.random.split(key, 10)

    x = jax.random.normal(keys[0], (N, Cin, H, W), dtype=jnp.float32)

    # Conv weights generated directly in HWIO layout (kh, kw, Cin, Cout).
    w1 = jax.random.normal(keys[1], (KSIZE, KSIZE, Cin, C1), jnp.float32) * 0.1
    w2 = jax.random.normal(keys[2], (C1, C2), jnp.float32) * 0.1

    # BatchNorm (inference-mode) parameters -> folded scale/bias.
    g1 = 0.5 + jax.random.uniform(keys[3], (C1,), jnp.float32)
    be1 = 0.1 * jax.random.normal(keys[4], (C1,), jnp.float32)
    m1 = 0.1 * jax.random.normal(keys[5], (C1,), jnp.float32)
    v1 = 0.5 + jax.random.uniform(keys[6], (C1,), jnp.float32)
    s1, b1 = _fold_bn(g1, be1, m1, v1)

    g2 = 0.5 + jax.random.uniform(keys[7], (C2,), jnp.float32)
    be2 = 0.1 * jax.random.normal(keys[8], (C2,), jnp.float32)
    m2 = jnp.zeros((C2,), jnp.float32)
    v2 = 0.5 + jax.random.uniform(keys[9], (C2,), jnp.float32)
    s2, b2 = _fold_bn(g2, be2, m2, v2)

    out = scaled_prediction(x, w1, s1, b1, w2, s2, b2, num_classes)
    out = jax.block_until_ready(out)
    assert out.shape == (N, 3, H, W, 5 + num_classes), out.shape

    ref = _ref_scaled_prediction(x, w1, s1, b1, w2, s2, b2, num_classes)
    ref = jax.block_until_ready(ref)
    max_err = float(jnp.max(jnp.abs(out - ref)))
    # bf16 matmul operands -> tolerance looser than the old f32-only 1e-4 check.
    assert jnp.allclose(out, ref, atol=1e-2, rtol=1e-2), max_err

    print("KERNEL_OK")
</pallas_src>

<mosaic_0001>
module attributes {stable_mosaic.version = 11 : i64} {
  func.func @_scaled_pred_kernel(%arg0: i32, %arg1: memref<1x16x16x4xbf16, #tpu.memory_space<vmem>>, %arg2: memref<36x8xbf16, #tpu.memory_space<vmem>>, %arg3: memref<1x8xf32, #tpu.memory_space<vmem>>, %arg4: memref<1x8xf32, #tpu.memory_space<vmem>>, %arg5: memref<8x128xbf16, #tpu.memory_space<vmem>>, %arg6: memref<1x128xf32, #tpu.memory_space<vmem>>, %arg7: memref<1x128xf32, #tpu.memory_space<vmem>>, %arg8: memref<256x128xf32, #tpu.memory_space<vmem>>) attributes {dimension_semantics = [#tpu.dimension_semantics<parallel>], iteration_bounds = array<i64: 2>, scalar_prefetch = 0 : i64, scratch_operands = 0 : i64, tpu.core_type = #tpu.core_type<tc>, window_params = [{transform_indices = @transform_0, window_bounds = array<i64: 1, 16, 16, 4>}, {pipeline_mode = #tpu.pipeline_mode<synchronous>, transform_indices = @transform_1, window_bounds = array<i64: 36, 8>}, {pipeline_mode = #tpu.pipeline_mode<synchronous>, transform_indices = @transform_2, window_bounds = array<i64: 1, 8>}, {pipeline_mode = #tpu.pipeline_mode<synchronous>, transform_indices = @transform_3, window_bounds = array<i64: 1, 8>}, {pipeline_mode = #tpu.pipeline_mode<synchronous>, transform_indices = @transform_4, window_bounds = array<i64: 8, 128>}, {pipeline_mode = #tpu.pipeline_mode<synchronous>, transform_indices = @transform_5, window_bounds = array<i64: 1, 128>}, {pipeline_mode = #tpu.pipeline_mode<synchronous>, transform_indices = @transform_6, window_bounds = array<i64: 1, 128>}, {transform_indices = @transform_7, window_bounds = array<i64: 256, 128>}]} {
    %c0 = arith.constant 0 : index
    %c0_0 = arith.constant 0 : index
    %c0_1 = arith.constant 0 : index
    %c0_2 = arith.constant 0 : index
    %0 = vector.load %arg1[%c0, %c0_0, %c0_1, %c0_2] : memref<1x16x16x4xbf16, #tpu.memory_space<vmem>>, vector<1x16x16x4xbf16>
    %1 = arith.extf %0 : vector<1x16x16x4xbf16> to vector<1x16x16x4xf32>
    %cst = arith.constant 0.000000e+00 : f32
    %2 = vector.broadcast %cst : f32 to vector<1x1x16x4xf32>
    %3 = tpu.concatenate %2, %1, %2 in 1 : vector<1x1x16x4xf32>, vector<1x16x16x4xf32>, vector<1x1x16x4xf32> -> vector<1x18x16x4xf32>
    %cst_3 = arith.constant 0.000000e+00 : f32
    %4 = vector.broadcast %cst_3 : f32 to vector<1x18x1x4xf32>
    %5 = tpu.concatenate %4, %3, %4 in 2 : vector<1x18x1x4xf32>, vector<1x18x16x4xf32>, vector<1x18x1x4xf32> -> vector<1x18x18x4xf32>
    %6 = vector.extract_strided_slice %5 {offsets = [0, 0, 0, 0], sizes = [1, 16, 16, 4], strides = [1, 1, 1, 1]} : vector<1x18x18x4xf32> to vector<1x16x16x4xf32>
    %7 = vector.extract_strided_slice %5 {offsets = [0, 0, 1, 0], sizes = [1, 16, 16, 4], strides = [1, 1, 1, 1]} : vector<1x18x18x4xf32> to vector<1x16x16x4xf32>
    %8 = vector.extract_strided_slice %5 {offsets = [0, 0, 2, 0], sizes = [1, 16, 16, 4], strides = [1, 1, 1, 1]} : vector<1x18x18x4xf32> to vector<1x16x16x4xf32>
    %9 = vector.extract_strided_slice %5 {offsets = [0, 1, 0, 0], sizes = [1, 16, 16, 4], strides = [1, 1, 1, 1]} : vector<1x18x18x4xf32> to vector<1x16x16x4xf32>
    %10 = vector.extract_strided_slice %5 {offsets = [0, 1, 1, 0], sizes = [1, 16, 16, 4], strides = [1, 1, 1, 1]} : vector<1x18x18x4xf32> to vector<1x16x16x4xf32>
    %11 = vector.extract_strided_slice %5 {offsets = [0, 1, 2, 0], sizes = [1, 16, 16, 4], strides = [1, 1, 1, 1]} : vector<1x18x18x4xf32> to vector<1x16x16x4xf32>
    %12 = vector.extract_strided_slice %5 {offsets = [0, 2, 0, 0], sizes = [1, 16, 16, 4], strides = [1, 1, 1, 1]} : vector<1x18x18x4xf32> to vector<1x16x16x4xf32>
    %13 = vector.extract_strided_slice %5 {offsets = [0, 2, 1, 0], sizes = [1, 16, 16, 4], strides = [1, 1, 1, 1]} : vector<1x18x18x4xf32> to vector<1x16x16x4xf32>
    %14 = vector.extract_strided_slice %5 {offsets = [0, 2, 2, 0], sizes = [1, 16, 16, 4], strides = [1, 1, 1, 1]} : vector<1x18x18x4xf32> to vector<1x16x16x4xf32>
    %15 = tpu.concatenate %6, %7, %8, %9, %10, %11, %12, %13, %14 in 3 : vector<1x16x16x4xf32>, vector<1x16x16x4xf32>, vector<1x16x16x4xf32>, vector<1x16x16x4xf32>, vector<1x16x16x4xf32>, vector<1x16x16x4xf32>, vector<1x16x16x4xf32>, vector<1x16x16x4xf32>, vector<1x16x16x4xf32> -> vector<1x16x16x36xf32>
    %16 = vector.shape_cast %15 : vector<1x16x16x36xf32> to vector<256x36xf32>
    %17 = arith.truncf %16 : vector<256x36xf32> to vector<256x36xbf16>
    %c0_4 = arith.constant 0 : index
    %c0_5 = arith.constant 0 : index
    %18 = vector.load %arg2[%c0_4, %c0_5] : memref<36x8xbf16, #tpu.memory_space<vmem>>, vector<36x8xbf16>
    %cst_6 = arith.constant dense<0.000000e+00> : vector<256x8xf32>
    %19 = tpu.matmul %17, %18, %cst_6 {dimension_numbers = #tpu.dot_dimension_numbers<[1], [0], [0], [1], [0, 0, 1, 1], [], []>} : vector<256x36xbf16>, vector<36x8xbf16>, vector<256x8xf32> -> vector<256x8xf32>
    %c0_7 = arith.constant 0 : index
    %c0_8 = arith.constant 0 : index
    %20 = vector.load %arg3[%c0_7, %c0_8] : memref<1x8xf32, #tpu.memory_space<vmem>>, vector<1x8xf32>
    %21 = vector.broadcast %20 : vector<1x8xf32> to vector<256x8xf32>
    %22 = arith.mulf %19, %21 : vector<256x8xf32>
    %c0_9 = arith.constant 0 : index
    %c0_10 = arith.constant 0 : index
    %23 = vector.load %arg4[%c0_9, %c0_10] : memref<1x8xf32, #tpu.memory_space<vmem>>, vector<1x8xf32>
    %24 = vector.broadcast %23 : vector<1x8xf32> to vector<256x8xf32>
    %25 = arith.addf %22, %24 : vector<256x8xf32>
    %cst_11 = arith.constant 0.000000e+00 : f32
    %26 = vector.broadcast %cst_11 : f32 to vector<256x8xf32>
    %27 = arith.cmpf ogt, %25, %26 : vector<256x8xf32>
    %cst_12 = arith.constant 1.000000e-01 : f32
    %28 = vector.broadcast %cst_12 : f32 to vector<256x8xf32>
    %29 = arith.mulf %28, %25 : vector<256x8xf32>
    %30 = arith.select %27, %25, %29 : vector<256x8xi1>, vector<256x8xf32>
    %31 = arith.truncf %30 : vector<256x8xf32> to vector<256x8xbf16>
    %c0_13 = arith.constant 0 : index
    %c0_14 = arith.constant 0 : index
    %32 = vector.load %arg5[%c0_13, %c0_14] : memref<8x128xbf16, #tpu.memory_space<vmem>>, vector<8x128xbf16>
    %cst_15 = arith.constant dense<0.000000e+00> : vector<256x128xf32>
    %33 = tpu.matmul %31, %32, %cst_15 {dimension_numbers = #tpu.dot_dimension_numbers<[1], [0], [0], [1], [0, 0, 1, 1], [], []>} : vector<256x8xbf16>, vector<8x128xbf16>, vector<256x128xf32> -> vector<256x128xf32>
    %c0_16 = arith.constant 0 : index
    %c0_17 = arith.constant 0 : index
    %34 = vector.load %arg6[%c0_16, %c0_17] : memref<1x128xf32, #tpu.memory_space<vmem>>, vector<1x128xf32>
    %35 = vector.broadcast %34 : vector<1x128xf32> to vector<256x128xf32>
    %36 = arith.mulf %33, %35 : vector<256x128xf32>
    %c0_18 = arith.constant 0 : index
    %c0_19 = arith.constant 0 : index
    %37 = vector.load %arg7[%c0_18, %c0_19] : memref<1x128xf32, #tpu.memory_space<vmem>>, vector<1x128xf32>
    %38 = vector.broadcast %37 : vector<1x128xf32> to vector<256x128xf32>
    %39 = arith.addf %36, %38 : vector<256x128xf32>
    %cst_20 = arith.constant 0.000000e+00 : f32
    %40 = vector.broadcast %cst_20 : f32 to vector<256x128xf32>
    %41 = arith.cmpf ogt, %39, %40 : vector<256x128xf32>
    %cst_21 = arith.constant 1.000000e-01 : f32
    %42 = vector.broadcast %cst_21 : f32 to vector<256x128xf32>
    %43 = arith.mulf %42, %39 : vector<256x128xf32>
    %44 = arith.select %41, %39, %43 : vector<256x128xi1>, vector<256x128xf32>
    %c0_22 = arith.constant 0 : index
    %c0_23 = arith.constant 0 : index
    %45 = vector.load %arg8[%c0_22, %c0_23] : memref<256x128xf32, #tpu.memory_space<vmem>>, vector<256x128xf32>
    tpu.vector_store %arg8[%c0_22, %c0_23], %44 {strides = array<i32>} : memref<256x128xf32, #tpu.memory_space<vmem>>, vector<256x128xf32>,
    return
  }
  func.func @transform_0(%arg0: i32) -> (i32, i32, i32, i32) {
    %c0_i32 = arith.constant 0 : i32
    %c0_i32_0 = arith.constant 0 : i32
    %c0_i32_1 = arith.constant 0 : i32
    %c0_i32_2 = arith.constant 0 : i32
    return %arg0, %c0_i32, %c0_i32_0, %c0_i32_1 : i32, i32, i32, i32
  }
  func.func @transform_1(%arg0: i32) -> (i32, i32) {
    %c0_i32 = arith.constant 0 : i32
    %c0_i32_0 = arith.constant 0 : i32
    %c0_i32_1 = arith.constant 0 : i32
    return %c0_i32, %c0_i32_0 : i32, i32
  }
  func.func @transform_2(%arg0: i32) -> (i32, i32) {
    %c0_i32 = arith.constant 0 : i32
    %c0_i32_0 = arith.constant 0 : i32
    %c0_i32_1 = arith.constant 0 : i32
    return %c0_i32, %c0_i32_0 : i32, i32
  }
  func.func @transform_3(%arg0: i32) -> (i32, i32) {
    %c0_i32 = arith.constant 0 : i32
    %c0_i32_0 = arith.constant 0 : i32
    %c0_i32_1 = arith.constant 0 : i32
    return %c0_i32, %c0_i32_0 : i32, i32
  }
  func.func @transform_4(%arg0: i32) -> (i32, i32) {
    %c0_i32 = arith.constant 0 : i32
    %c0_i32_0 = arith.constant 0 : i32
    %c0_i32_1 = arith.constant 0 : i32
    return %c0_i32, %c0_i32_0 : i32, i32
  }
  func.func @transform_5(%arg0: i32) -> (i32, i32) {
    %c0_i32 = arith.constant 0 : i32
    %c0_i32_0 = arith.constant 0 : i32
    %c0_i32_1 = arith.constant 0 : i32
    return %c0_i32, %c0_i32_0 : i32, i32
  }
  func.func @transform_6(%arg0: i32) -> (i32, i32) {
    %c0_i32 = arith.constant 0 : i32
    %c0_i32_0 = arith.constant 0 : i32
    %c0_i32_1 = arith.constant 0 : i32
    return %c0_i32, %c0_i32_0 : i32, i32
  }
  func.func @transform_7(%arg0: i32) -> (i32, i32) {
    %c0_i32 = arith.constant 0 : i32
    %c0_i32_0 = arith.constant 0 : i32
    return %arg0, %c0_i32 : i32, i32
  }
}

</mosaic_0001>

<bundles_post_ra>
// kernel: tpu_custom_call.1
= control target key start
LH: loop header
LB: loop body
LE: loop exit
PB: predicated region body
PF: predicated region fallthrough
CT: control target
= control target key end

     0   :  { %12 = vsyncpa [#allocation3], 0  ;;  %s5147_s0 = inlined_call_operand.vmem [shape: bf16[2,16,16,4], index: 0, kind: input, shape index: {}]   ;;  %s5148_s1 = inlined_call_operand.vmem [shape: bf16[36,8], index: 1, kind: input, shape index: {}]   ;;  %s5149_s2 = inlined_call_operand.vmem [shape: f32[1,8], index: 2, kind: input, shape index: {}]   ;;  %s5150_s3 = inlined_call_operand.vmem [shape: f32[1,8], index: 3, kind: input, shape index: {}]   ;;  %s5151_s4 = inlined_call_operand.vmem [shape: bf16[8,128], index: 4, kind: input, shape index: {}]   ;;  %s5152_s5 = inlined_call_operand.vmem [shape: f32[1,128], index: 5, kind: input, shape index: {}]   ;;  %s5153_s6 = inlined_call_operand.vmem [shape: f32[1,128], index: 6, kind: input, shape index: {}]   ;;  %s5154_s7 = inlined_call_operand.hbm [shape: f32[512,128], index: 7, kind: output, shape index: {}]  }
   0x1   :  { %14 = vsyncpa [#allocation3 + $0x1], 0  ;;  %s3731_s24 = smov 0   ;;  %s3733_s25 = smov 0  }
   0x2   :  { %s3735_s26 = smov 0   ;;  %s3737_s27 = smov 0  }
   0x3 LB: > { %s3752_s28 = sadd.s32 4294967295, %s3678_s27   ;;  %s2684_s29 = sadd.s32 4294967294, %s3678_s27   ;;  %s3678_s27 = sphi %s3737_s27, %s5168_s27   ;;  %s3674_s26 = sphi %s3735_s26, %s5167_s26   ;;  %s3670_s25 = sphi %s3733_s25, %s5166_s25   ;;  %s3666_s24 = sphi %s3731_s24, %s5165_s24  }
   0x4   : > { %s3756_s30 = sadd.s32 1, %s3678_s27   ;;  %s179_s8 = sadd.s32 1, %s3674_s26 }
   0x5   : > { %s176_s9 = ssub.s32 %s3678_s27, %s3756_s30  ;;  %p189_p0 = scmp.ne.s32.totalorder %s3674_s26, %s3670_s25 }
   0x6   : > { %p177_p1 = scmp.eq.s32.totalorder %s176_s9, 0  ;;  %p190_p2 = scmp.eq.s32.totalorder %s3752_s28, 1 }
   0x7   : > { %p195_p3 = scmp.ne.s32.totalorder %s3670_s25, %s3666_s24  ;;  %p196_p4 = scmp.eq.s32.totalorder %s2684_s29, 1 }
   0x8   : > { %s3767_s10 = scalar_select %p177_p1, %s3674_s26, %s179_s8  }
   0x9   : > { %p3769_p5 = por %p190_p2, %p189_p0  ;;  %p3773_p6 = por %p196_p4, %p195_p3 }
   0xa   : > { %p2687_p7 = scmp.ge.s32.totalorder %s3678_s27, 1  ;;  %p240_p8 = scmp.lt.s32.totalorder %s3678_s27, 3 }
   0xc   : > { %p241_p9 = pnand %p2687_p7, %p240_p8 }
   0xe   : > { %244 = sbr.rel (%p241_p9) target bundleno = 833 (0x341), region = 48 }
  0x13   : > { %vm376_vm0 = vcmask 1040384   ;;  %v3680_v0 = vmov 0.0   ;;  %p272_p10 = scmp.lt.s32.totalorder %s3752_s28, 1  ;;  %vm719_vm1 = vcmask 1045504   ;;  %vm542_vm2 = vcmask 1046528   ;;  %s3681_s18 = smov 8  }
  0x14   : > { %v3779_v1 = vrot.slane %v3680_v0, 7  ;;  %s3682_s19 = smov 4   ;;  %s3683_s20 = smov 12   ;;  %vm1833_vm3 = vcmask 1041408   ;;  %vm1484_vm4 = vcmask 31744   ;;  %vm1517_vm5 = vcmask 64512  }
  0x15   : > { %s273_s13 = scalar_select %p272_p10, %s3752_s28, 1  ;;  %vm1550_vm6 = vcmask 97280   ;;  %vm1583_vm7 = vcmask 130048   ;;  %vm1616_vm8 = vcmask 162816   ;;  %vm1649_vm9 = vcmask 195584  }
  0x16   : > { %v3784_v2 = vsel %vm376_vm0, 0.0, %v3779_v1  ;;  %v493_v3 = vsel %vm376_vm0, %v3779_v1, 0.0  ;;  %v721_v4 = vrot.slane %v3779_v1, 2  ;;  %v544_v5 = vrot.slane %v3779_v1, 1  ;;  %s3684_s21 = smov 16   ;;  %s3685_s22 = smov 20  }
  0x17   : > { %v720_v6 = vrot.slane %v3784_v2, 2  ;;  %v723_v7 = vrot.slane %v493_v3, 2  ;;  %v543_v8 = vrot.slane %v3784_v2, 1  ;;  %v546_v9 = vrot.slane %v493_v3, 1  ;;  %s2735_s14 = sshll.u32 %s273_s13, 7  ;;  %s3686_s23 = smov 24  }
  0x18   : > { %s3800_s17 = scalar_lea.vmem %s5147_s0, %s2735_s14  ;;  %s3687_s29 = smov 28   ;;  %vm1682_vm10 = vcmask 228352   ;;  %vm1715_vm11 = vcmask 261120   ;;  %vm1784_vm12 = vcmask 293888   ;;  %vm2237_vm13 = vcmask 1043456  }
  0x19   : > { %v722_v10 = vsel %vm719_vm1, %v720_v6, %v721_v4  ;;  %v724_v11 = vsel %vm719_vm1, %v721_v4, %v723_v7  ;;  %v545_v12 = vsel %vm542_vm2, %v543_v8, %v544_v5  ;;  %v547_v13 = vsel %vm542_vm2, %v544_v5, %v546_v9  ;;  %v2801_v16 = vld [vmem:[%s3800_s17 + $0x8] sm:$0xff]   ;;  %v2738_v17 = vld [vmem:[%s3800_s17] sm:$0xff]   ;;  %v2802_v18 = vld [vmem:[%s3800_s17 + $0x10] sm:$0xff]   ;;  %s3688_s8 = smov 32   ;;  %s269_s13 = sand.u32 1, %s3670_s25  }
  0x1a   : > { %v3802_v14 = vpack.i.bf16 %v724_v11, %v722_v10  ;;  %v3804_v15 = vpack.i.bf16 %v547_v13, %v545_v12  ;;  %v2743_v19 = vunpack.c.l.bf16 %v2801_v16  ;;  %v2744_v20 = vunpack.c.h.bf16 %v2801_v16  ;;  %v2803_v10 = vld [vmem:[%s3800_s17 + $0x18] sm:$0xff]   ;;  %s2688_s16 = sshll.u32 %s269_s13, 8 }
  0x1b   : > { %v2739_v21 = vunpack.c.l.bf16 %v2738_v17  ;;  %v2740_v22 = vunpack.c.h.bf16 %v2738_v17  ;;  %v2747_v23 = vunpack.c.l.bf16 %v2802_v18  ;;  %v2748_v24 = vunpack.c.h.bf16 %v2802_v18  ;;  %s4993_s9 = scalar_lea.vmem [#allocation2], %s2688_s16 }
  0x1c   : > { %2981 = vrot.lane.b32.xlu1 %v3802_v14, %s3681_s18  ;;  %2976 = vrot.lane.b32.xlu0 %v3804_v15, %s3682_s19  ;;  %v382_v25 = vrot.slane %v2743_v19, 7  ;;  %v383_v26 = vrot.slane %v2744_v20, 7  ;;  %v2751_v12 = vunpack.c.l.bf16 %v2803_v10  ;;  %v2752_v18 = vunpack.c.h.bf16 %v2803_v10 }
  0x1d   : > { %v379_v27 = vrot.slane %v2739_v21, 7  ;;  %v380_v28 = vrot.slane %v2740_v22, 7  ;;  %v385_v29 = vrot.slane %v2747_v23, 7  ;;  %v386_v30 = vrot.slane %v2748_v24, 7 }
  0x1e   : > { %v3814_v31 = vsel %vm376_vm0, %v382_v25, %v383_v26  ;;  %v3817_v32 = vsel %vm376_vm0, 0.0, %v382_v25  ;;  %v495_v44 = vsel %vm376_vm0, %v383_v26, 0.0  ;;  %v388_v21 = vrot.slane %v2751_v12, 7 }
  0x1f   : > { %v3820_v33 = vsel %vm376_vm0, %v379_v27, %v380_v28  ;;  %v3823_v34 = vsel %vm376_vm0, 0.0, %v379_v27  ;;  %v2990_v35 = vpack.i.bf16 %v3814_v31, %v3817_v32  ;;  %v494_v37 = vsel %vm376_vm0, %v380_v28, 0.0  ;;  %v2804_v27 = vld [vmem:[%s3800_s17 + $0x20] sm:$0xff]  }
  0x20   : > { %v2985_v36 = vpack.i.bf16 %v3820_v33, %v3823_v34  ;;  %v725_v38 = vrot.slane %v3823_v34, 2  ;;  %v726_v39 = vrot.slane %v3820_v33, 2  ;;  %v728_v40 = vrot.slane %v494_v37, 2 }
  0x21   : > { %v548_v41 = vrot.slane %v3823_v34, 1  ;;  %v549_v42 = vrot.slane %v3820_v33, 1  ;;  %2991 = vrot.lane.b32.xlu1 %v2990_v35, %s3683_s20  ;;  %v551_v43 = vrot.slane %v494_v37, 1  ;;  %v553_v45 = vrot.slane %v3817_v32, 1 }
  0x22   : > { %2986 = vrot.lane.b32.xlu0 %v2985_v36, %s3683_s20  ;;  %v554_v46 = vrot.slane %v3814_v31, 1  ;;  %v727_v47 = vsel %vm719_vm1, %v725_v38, %v726_v39  ;;  %v729_v48 = vsel %vm719_vm1, %v726_v39, %v728_v40  ;;  %v556_v50 = vrot.slane %v495_v44, 1 }
  0x23   : > { %v550_v49 = vsel %vm542_vm2, %v548_v41, %v549_v42  ;;  %v3000_v51 = vpack.i.bf16 %v729_v48, %v727_v47  ;;  %v552_v52 = vsel %vm542_vm2, %v549_v42, %v551_v43  ;;  %v730_v54 = vrot.slane %v3817_v32, 2 }
  0x24   : > { %v555_v53 = vsel %vm542_vm2, %v553_v45, %v554_v46  ;;  %v2995_v55 = vpack.i.bf16 %v552_v52, %v550_v49  ;;  %v557_v56 = vsel %vm542_vm2, %v554_v46, %v556_v50  ;;  %v731_v57 = vrot.slane %v3814_v31, 2 }
  0x25   : > { %3001 = vrot.lane.b32.xlu1 %v3000_v51, %s3681_s18  ;;  %v3010_v58 = vpack.i.bf16 %v557_v56, %v555_v53  ;;  %v733_v59 = vrot.slane %v495_v44, 2  ;;  %v3852_v62 = vsel %vm376_vm0, %v385_v29, %v386_v30  ;;  %v3855_v63 = vsel %vm376_vm0, 0.0, %v385_v29 }
  0x26   : > { %2996 = vrot.lane.b32.xlu0 %v2995_v55, %s3682_s19  ;;  %v732_v60 = vsel %vm719_vm1, %v730_v54, %v731_v57  ;;  %v496_v0 = vsel %vm376_vm0, %v386_v30, 0.0  ;;  %v558_v4 = vrot.slane %v3855_v63, 1  ;;  %v559_v5 = vrot.slane %v3852_v62, 1 }
  0x27   : > { %v734_v61 = vsel %vm719_vm1, %v731_v57, %v733_v59  ;;  %v561_v6 = vrot.slane %v496_v0, 1  ;;  %v3030_v7 = vpack.i.bf16 %v3852_v62, %v3855_v63  ;;  %v735_v13 = vrot.slane %v3855_v63, 2  ;;  %v3615_v59 = vld [vmem:[%s5148_s1 + $0x10] ss:$0 sps:$4 sm:$0x33]  }
  0x28   : > { %v3020_v3 = vpack.i.bf16 %v734_v61, %v732_v60  ;;  %v560_v8 = vsel %vm542_vm2, %v558_v4, %v559_v5  ;;  %v736_v16 = vrot.slane %v3852_v62, 2  ;;  %v738_v17 = vrot.slane %v496_v0, 2  ;;  %v3616_v61 = vld [vmem:[%s5148_s1 + $0x8] sm:$0xff]   ;;  %2924 = vmatprep.subr.msk.bf16.mxu0 %vm1833_vm3, %v3615_v59 }
  0x29   : > { %3011 = vrot.lane.b32.xlu1 %v3010_v58, %s3684_s21  ;;  %v562_v9 = vsel %vm542_vm2, %v559_v5, %v561_v6  ;;  %v389_v22 = vrot.slane %v2752_v18, 7  ;;  %v3883_v25 = vsel %vm376_vm0, 0.0, %v388_v21  ;;  %v2756_v36 = vunpack.c.h.bf16 %v2804_v27 }
  0x2a   : > { %3006 = vrot.lane.b32.xlu0 %v2995_v55, %s3684_s21  ;;  %v3040_v11 = vpack.i.bf16 %v562_v9, %v560_v8  ;;  %v737_v19 = vsel %vm719_vm1, %v735_v13, %v736_v16  ;;  %v739_v20 = vsel %vm719_vm1, %v736_v16, %v738_v17  ;;  %v563_v28 = vrot.slane %v3883_v25, 1  ;;  %v3617_v8 = vld [vmem:[%s5148_s1] sm:$0xff]  }
  0x2b   : > { %v3055_v23 = vpack.i.bf16 %v739_v20, %v737_v19  ;;  %v3880_v24 = vsel %vm376_vm0, %v388_v21, %v389_v22  ;;  %v497_v26 = vsel %vm376_vm0, %v389_v22, 0.0  ;;  %v740_v38 = vrot.slane %v3883_v25, 2  ;;  %v2806_v19 = vld [vmem:[%s3800_s17 + $0x30] sm:$0xff]  }
  0x2c   : > { %v564_v29 = vrot.slane %v3880_v24, 1  ;;  %v566_v30 = vrot.slane %v497_v26, 1  ;;  %v3080_v37 = vpack.i.bf16 %v3880_v24, %v3883_v25  ;;  %v741_v41 = vrot.slane %v3880_v24, 2 }
  0x2d   : > { %3021 = vrot.lane.b32.xlu1 %v3020_v3, %s3685_s22  ;;  %v743_v42 = vrot.slane %v497_v26, 2  ;;  %v392_v44 = vrot.slane %v2756_v36, 7  ;;  %v2764_v26 = vunpack.c.h.bf16 %v2806_v19 }
  0x2e   : > { %3016 = vrot.lane.b32.xlu0 %v3000_v51, %s3685_s22  ;;  %v565_v39 = vsel %vm542_vm2, %v563_v28, %v564_v29  ;;  %v567_v40 = vsel %vm542_vm2, %v564_v29, %v566_v30  ;;  %v742_v46 = vsel %vm719_vm1, %v740_v38, %v741_v41 }
  0x2f   : > { %v3090_v45 = vpack.i.bf16 %v567_v40, %v565_v39  ;;  %v744_v47 = vsel %vm719_vm1, %v741_v41, %v743_v42  ;;  %v498_v50 = vsel %vm376_vm0, %v392_v44, 0.0  ;;  %v398_v38 = vrot.slane %v2764_v26, 7 }
  0x30   : > { %v3100_v51 = vpack.i.bf16 %v744_v47, %v742_v46  ;;  %v571_v54 = vrot.slane %v498_v50, 1  ;;  %v748_v6 = vrot.slane %v498_v50, 2 }
  0x31   : > { %3031 = vrot.lane.b32.xlu1 %v3030_v7, %s3686_s23 }
  0x32   : > { %3026 = vrot.lane.b32.xlu0 %v2990_v35, %s3686_s23  ;;  %v2755_v35 = vunpack.c.l.bf16 %v2804_v27 }
  0x34   : > { %v391_v43 = vrot.slane %v2755_v35, 7 }
  0x35   : > { %3041 = vrot.lane.b32.xlu1 %v3040_v11, %s3687_s29 }
  0x36   : > { %3036 = vrot.lane.b32.xlu0 %v3010_v58, %s3687_s29  ;;  %v3904_v48 = vsel %vm376_vm0, %v391_v43, %v392_v44  ;;  %v3907_v49 = vsel %vm376_vm0, 0.0, %v391_v43  ;;  %v500_v44 = vsel %vm376_vm0, %v398_v38, 0.0 }
  0x37   : > { %v568_v52 = vrot.slane %v3907_v49, 1  ;;  %v569_v53 = vrot.slane %v3904_v48, 1  ;;  %v3110_v55 = vpack.i.bf16 %v3904_v48, %v3907_v49  ;;  %v745_v4 = vrot.slane %v3907_v49, 2 }
  0x38   : > { %v746_v5 = vrot.slane %v3904_v48, 2  ;;  %v581_v50 = vrot.slane %v500_v44, 1 }
  0x39   : > { %3051 = vrot.lane.b32.xlu1 %v3010_v58, %s3682_s19  ;;  %v570_v56 = vsel %vm542_vm2, %v568_v52, %v569_v53  ;;  %v572_v57 = vsel %vm542_vm2, %v569_v53, %v571_v54  ;;  %v2805_v58 = vld [vmem:[%s3800_s17 + $0x28] sm:$0xff]   ;;  %v2807_v54 = vld [vmem:[%s3800_s17 + $0x38] sm:$0xff]  }
  0x3a   : > { %3046 = vrot.lane.b32.xlu0 %v3020_v3, %s3688_s8  ;;  %v3120_v60 = vpack.i.bf16 %v572_v57, %v570_v56  ;;  %v2759_v0 = vunpack.c.l.bf16 %v2805_v58  ;;  %v747_v9 = vsel %vm719_vm1, %v745_v4, %v746_v5  ;;  %v749_v10 = vsel %vm719_vm1, %v746_v5, %v748_v6 }
  0x3b   : > { %v3135_v13 = vpack.i.bf16 %v749_v10, %v747_v9  ;;  %v2808_v9 = vld [vmem:[%s3800_s17 + $0x40] sm:$0xff]  }
  0x3d   : > { %3061 = vrot.lane.b32.xlu1 %v3040_v11, %s3682_s19 }
  0x3e   : > { %3056 = vrot.lane.b32.xlu0 %v3055_v23, %s3688_s8 }
  0x41   : > { %3071 = vrot.lane.b32.xlu1 %v3055_v23, %s3681_s18 }
  0x42   : > { %3066 = vrot.lane.b32.xlu0 %v3020_v3, %s3681_s18  ;;  %v2760_v3 = vunpack.c.h.bf16 %v2805_v58  ;;  %v758_v58 = vrot.slane %v500_v44, 2 }
  0x44   : > { %v395_v12 = vrot.slane %v2760_v3, 7 }
  0x45   : > { %3081 = vrot.lane.b32.xlu1 %v3080_v37, %s3683_s20 }
  0x46   : > { %3076 = vrot.lane.b32.xlu0 %v3030_v7, %s3683_s20  ;;  %v1835_v7 = vsel %vm1833_vm3, %v3615_v59, 0  ;;  %v499_v18 = vsel %vm376_vm0, %v395_v12, 0.0  ;;  %v2767_v59 = vunpack.c.l.bf16 %v2807_v54 }
  0x47   : > { %2853 = vmatpush3.bf16.msra.mxu0 %v1835_v7  ;;  %v576_v22 = vrot.slane %v499_v18, 1  ;;  %v753_v36 = vrot.slane %v499_v18, 2  ;;  %v2772_v18 = vunpack.c.h.bf16 %v2808_v9 }
  0x48   : > { %2854 = vmatprep.subr.bf16.mxu0 %v3616_v61  ;;  %v400_v3 = vrot.slane %v2767_v59, 7 }
  0x49   : > { %3091 = vrot.lane.b32.xlu1 %v3090_v45, %s3684_s21 }
  0x4a   : > { %3086 = vrot.lane.b32.xlu0 %v3040_v11, %s3684_s21  ;;  %v394_v11 = vrot.slane %v2759_v0, 7  ;;  %v3996_v7 = vsel %vm376_vm0, 0.0, %v400_v3 }
  0x4b   : > { %2855 = vmatpush3.bf16.msra.mxu0 %v3616_v61  ;;  %v583_v10 = vrot.slane %v3996_v7, 1 }
  0x4c   : > { %2856 = vmatprep.subr.bf16.mxu0 %v3617_v8  ;;  %v3941_v16 = vsel %vm376_vm0, %v394_v11, %v395_v12  ;;  %v3944_v17 = vsel %vm376_vm0, 0.0, %v394_v11 }
  0x4d   : > { %3101 = vrot.lane.b32.xlu1 %v3100_v51, %s3685_s22  ;;  %v573_v20 = vrot.slane %v3944_v17, 1  ;;  %v574_v21 = vrot.slane %v3941_v16, 1  ;;  %v3160_v27 = vpack.i.bf16 %v3941_v16, %v3944_v17  ;;  %v750_v28 = vrot.slane %v3944_v17, 2 }
  0x4e   : > { %3096 = vrot.lane.b32.xlu0 %v3055_v23, %s3685_s22  ;;  %v2763_v23 = vunpack.c.l.bf16 %v2806_v19  ;;  %v751_v35 = vrot.slane %v3941_v16, 2 }
  0x4f   : > { %2857 = vmatpush3.bf16.msra.mxu0 %v3617_v8  ;;  %v575_v29 = vsel %vm542_vm2, %v573_v20, %v574_v21  ;;  %v577_v30 = vsel %vm542_vm2, %v574_v21, %v576_v22  ;;  %v760_v20 = vrot.slane %v3996_v7, 2 }
  0x50   : > { %v3170_v39 = vpack.i.bf16 %v577_v30, %v575_v29  ;;  %v752_v40 = vsel %vm719_vm1, %v750_v28, %v751_v35  ;;  %v754_v41 = vsel %vm719_vm1, %v751_v35, %v753_v36  ;;  %v404_v28 = vrot.slane %v2772_v18, 7 }
  0x51   : > { %3111 = vrot.lane.b32.xlu1 %v3110_v55, %s3686_s23 }
  0x52   : > { %3106 = vrot.lane.b32.xlu0 %v3080_v37, %s3686_s23  ;;  %v397_v37 = vrot.slane %v2763_v23, 7 }
  0x54   : > { %v3965_v42 = vsel %vm376_vm0, %v397_v37, %v398_v38  ;;  %v3968_v43 = vsel %vm376_vm0, 0.0, %v397_v37  ;;  %v502_v38 = vsel %vm376_vm0, %v404_v28, 0.0 }
  0x55   : > { %3121 = vrot.lane.b32.xlu1 %v3120_v60, %s3687_s29  ;;  %v578_v46 = vrot.slane %v3968_v43, 1  ;;  %v579_v47 = vrot.slane %v3965_v42, 1  ;;  %v755_v56 = vrot.slane %v3968_v43, 2  ;;  %v756_v57 = vrot.slane %v3965_v42, 2 }
  0x56   : > { %3116 = vrot.lane.b32.xlu0 %v3090_v45, %s3687_s29  ;;  %v591_v44 = vrot.slane %v502_v38, 1 }
  0x57   : > { %v580_v52 = vsel %vm542_vm2, %v578_v46, %v579_v47  ;;  %v582_v53 = vsel %vm542_vm2, %v579_v47, %v581_v50  ;;  %v757_v61 = vsel %vm719_vm1, %v755_v56, %v756_v57  ;;  %v759_v0 = vsel %vm719_vm1, %v756_v57, %v758_v58 }
  0x58   : > { %v3215_v5 = vpack.i.bf16 %v759_v0, %v757_v61 }
  0x59   : > { %3131 = vrot.lane.b32.xlu1 %v3090_v45, %s3682_s19  ;;  %v3180_v45 = vpack.i.bf16 %v754_v41, %v752_v40 }
  0x5a   : > { %3126 = vrot.lane.b32.xlu0 %v3100_v51, %s3688_s8 }
  0x5d   : > { %3141 = vrot.lane.b32.xlu1 %v3120_v60, %s3682_s19 }
  0x5e   : > { %3136 = vrot.lane.b32.xlu0 %v3135_v13, %s3688_s8 }
  0x61   : > { %3151 = vrot.lane.b32.xlu1 %v3135_v13, %s3681_s18 }
  0x62   : > { %3146 = vrot.lane.b32.xlu0 %v3100_v51, %s3681_s18  ;;  %v3190_v51 = vpack.i.bf16 %v3965_v42, %v3968_v43 }
  0x65   : > { %3161 = vrot.lane.b32.xlu1 %v3160_v27, %s3683_s20 }
  0x66   : > { %3156 = vrot.lane.b32.xlu0 %v3110_v55, %s3683_s20  ;;  %v3200_v55 = vpack.i.bf16 %v582_v53, %v580_v52 }
  0x69   : > { %3171 = vrot.lane.b32.xlu1 %v3170_v39, %s3684_s21 }
  0x6a   : > { %3166 = vrot.lane.b32.xlu0 %v3120_v60, %s3684_s21  ;;  %v2768_v60 = vunpack.c.h.bf16 %v2807_v54 }
  0x6c   : > { %v401_v4 = vrot.slane %v2768_v60, 7 }
  0x6d   : > { %3181 = vrot.lane.b32.xlu1 %v3180_v45, %s3685_s22 }
  0x6e   : > { %3176 = vrot.lane.b32.xlu0 %v3135_v13, %s3685_s22  ;;  %v3993_v6 = vsel %vm376_vm0, %v400_v3, %v401_v4  ;;  %v501_v8 = vsel %vm376_vm0, %v401_v4, 0.0  ;;  %v2771_v13 = vunpack.c.l.bf16 %v2808_v9  ;;  %v768_v3 = vrot.slane %v502_v38, 2 }
  0x6f   : > { %v584_v11 = vrot.slane %v3993_v6, 1  ;;  %v586_v12 = vrot.slane %v501_v8, 1  ;;  %v3240_v19 = vpack.i.bf16 %v3993_v6, %v3996_v7  ;;  %v761_v23 = vrot.slane %v3993_v6, 2 }
  0x70   : > { %v763_v26 = vrot.slane %v501_v8, 2 }
  0x71   : > { %3191 = vrot.lane.b32.xlu1 %v3190_v51, %s3686_s23  ;;  %v585_v21 = vsel %vm542_vm2, %v583_v10, %v584_v11  ;;  %v587_v22 = vsel %vm542_vm2, %v584_v11, %v586_v12  ;;  %v762_v30 = vsel %vm719_vm1, %v760_v20, %v761_v23 }
  0x72   : > { %3186 = vrot.lane.b32.xlu0 %v3160_v27, %s3686_s23  ;;  %v403_v27 = vrot.slane %v2771_v13, 7  ;;  %v3250_v29 = vpack.i.bf16 %v587_v22, %v585_v21  ;;  %v764_v35 = vsel %vm719_vm1, %v761_v23, %v763_v26 }
  0x74   : > { %v4017_v36 = vsel %vm376_vm0, %v403_v27, %v404_v28  ;;  %v4020_v37 = vsel %vm376_vm0, 0.0, %v403_v27 }
  0x75   : > { %3201 = vrot.lane.b32.xlu1 %v3200_v55, %s3687_s29  ;;  %v588_v40 = vrot.slane %v4020_v37, 1  ;;  %v589_v41 = vrot.slane %v4017_v36, 1  ;;  %v4038_v50 = vpack.i.bf16 %v4017_v36, %v4020_v37  ;;  %v765_v58 = vrot.slane %v4020_v37, 2 }
  0x76   : > { %3196 = vrot.lane.b32.xlu0 %v3170_v39, %s3687_s29  ;;  %v766_v0 = vrot.slane %v4017_v36, 2 }
  0x77   : > { %v590_v52 = vsel %vm542_vm2, %v588_v40, %v589_v41  ;;  %v592_v53 = vsel %vm542_vm2, %v589_v41, %v591_v44 }
  0x78   : > { %v4046_v56 = vpack.i.bf16 %v592_v53, %v590_v52  ;;  %v767_v12 = vsel %vm719_vm1, %v765_v58, %v766_v0  ;;  %v769_v13 = vsel %vm719_vm1, %v766_v0, %v768_v3 }
  0x79   : > { %3211 = vrot.lane.b32.xlu1 %v3170_v39, %s3682_s19  ;;  %v4024_v39 = vpack.i.bf16 %v764_v35, %v762_v30  ;;  %v4076_v28 = vpack.i.bf16 %v769_v13, %v767_v12 }
  0x7a   : > { %3206 = vrot.lane.b32.xlu0 %v3180_v45, %s3688_s8 }
  0x7d   : > { %3221 = vrot.lane.b32.xlu1 %v3200_v55, %s3682_s19 }
  0x7e   : > { %3216 = vrot.lane.b32.xlu0 %v3215_v5, %s3688_s8 }
  0x81   : > { %3231 = vrot.lane.b32.xlu1 %v3215_v5, %s3681_s18 }
  0x82   : > { %3226 = vrot.lane.b32.xlu0 %v3180_v45, %s3681_s18  ;;  %v2809_v45 = vld [vmem:[%s3800_s17 + $0x48] sm:$0xff]  }
  0x83   : > { %v2776_v54 = vunpack.c.h.bf16 %v2809_v45 }
  0x85   : > { %3241 = vrot.lane.b32.xlu1 %v3240_v19, %s3683_s20  ;;  %v407_v59 = vrot.slane %v2776_v54, 7 }
  0x86   : > { %3236 = vrot.lane.b32.xlu0 %v3190_v51, %s3683_s20  ;;  %v2775_v51 = vunpack.c.l.bf16 %v2809_v45 }
  0x87   : > { %v503_v10 = vsel %vm376_vm0, %v407_v59, 0.0 }
  0x88   : > { %v406_v57 = vrot.slane %v2775_v51, 7  ;;  %v596_v23 = vrot.slane %v503_v10, 1  ;;  %v773_v30 = vrot.slane %v503_v10, 2 }
  0x89   : > { %3251 = vrot.lane.b32.xlu1 %v3250_v29, %s3684_s21 }
  0x8a   : > { %3246 = vrot.lane.b32.xlu0 %v3200_v55, %s3684_s21  ;;  %v2810_v55 = vld [vmem:[%s3800_s17 + $0x50] sm:$0xff]   ;;  %v4058_v8 = vsel %vm376_vm0, 0.0, %v406_v57  ;;  %v4062_v9 = vsel %vm376_vm0, %v406_v57, %v407_v59 }
  0x8b   : > { %v2779_v4 = vunpack.c.l.bf16 %v2810_v55  ;;  %v593_v21 = vrot.slane %v4058_v8, 1  ;;  %v594_v22 = vrot.slane %v4062_v9, 1  ;;  %v770_v26 = vrot.slane %v4058_v8, 2 }
  0x8c   : > { %v771_v27 = vrot.slane %v4062_v9, 2  ;;  %v4108_v0 = vpack.i.bf16 %v4062_v9, %v4058_v8 }
  0x8d   : > { %3261 = vrot.lane.b32.xlu1 %v4024_v39, %s3685_s22  ;;  %v409_v18 = vrot.slane %v2779_v4, 7  ;;  %v595_v44 = vsel %vm542_vm2, %v593_v21, %v594_v22  ;;  %v597_v45 = vsel %vm542_vm2, %v594_v22, %v596_v23  ;;  %v4130_v22 = vld [vmem:[%s3800_s17 + $0x58] sm:$0xff]   ;;  %v4133_v23 = vld [vmem:[%s3800_s17 + $0x60] sm:$0xff]  }
  0x8e   : > { %v4032_v46 = vpop.permute.xlu1 %2981  ;;  %v4034_v47 = vpop.permute.xlu0 %2976  ;;  %3256 = vrot.lane.b32.xlu0 %v3215_v5, %s3685_s22  ;;  %v2780_v5 = vunpack.c.h.bf16 %v2810_v55  ;;  %v772_v51 = vsel %vm719_vm1, %v770_v26, %v771_v27  ;;  %v774_v52 = vsel %vm719_vm1, %v771_v27, %v773_v30  ;;  %v4112_v10 = vpack.i.bf16 %v597_v45, %v595_v44 }
  0x8f   : > { %v2979_v57 = vunpack.i.h.bf16 %v4034_v47  ;;  %v2978_v58 = vunpack.i.l.bf16 %v4034_v47  ;;  %v4116_v47 = vpack.i.bf16 %v774_v52, %v772_v51 }
  0x91   : > { %3271 = vrot.lane.b32.xlu1 %v4038_v50, %s3686_s23  ;;  %v1486_v26 = vsel %vm1484_vm4, %v3779_v1, %v2979_v57  ;;  %v1485_v27 = vsel %vm1484_vm4, %v3784_v2, %v2978_v58 }
  0x92   : > { %3266 = vrot.lane.b32.xlu0 %v3240_v19, %s3686_s23  ;;  %v410_v19 = vrot.slane %v2780_v5, 7 }
  0x93   : > { %v4050_v60 = vpop.permute.xlu1 %2991 }
  0x94   : > { %v4052_v61 = vpop.permute.xlu0 %2986  ;;  %v4081_v38 = vsel %vm376_vm0, %v409_v18, %v410_v19  ;;  %v4087_v40 = vsel %vm376_vm0, %v410_v19, 0.0  ;;  %v2983_v19 = vunpack.i.l.bf16 %v4032_v46 }
  0x95   : > { %3281 = vrot.lane.b32.xlu1 %v4046_v56, %s3687_s29  ;;  %v599_v54 = vrot.slane %v4081_v38, 1  ;;  %v601_v55 = vrot.slane %v4087_v40, 1  ;;  %v2989_v44 = vunpack.i.h.bf16 %v4052_v61  ;;  %v2988_v45 = vunpack.i.l.bf16 %v4052_v61 }
  0x96   : > { %3276 = vrot.lane.b32.xlu0 %v3250_v29, %s3687_s29  ;;  %v2994_v61 = vunpack.i.h.bf16 %v4050_v60  ;;  %v1518_v58 = vsel %vm1517_vm5, %v1485_v27, %v2983_v19 }
  0x97   : > { %v4065_v11 = vpop.permute.xlu1 %3001  ;;  %v602_v21 = vsel %vm542_vm2, %v599_v54, %v601_v55  ;;  %v2784_v55 = vunpack.c.h.bf16 %v4130_v22 }
  0x98   : > { %v2997_v20 = vpop.permute.xlu0 %2996  ;;  %v3003_v30 = vunpack.i.l.bf16 %v4065_v11 }
  0x99   : > { %3291 = vrot.lane.b32.xlu1 %v3250_v29, %s3682_s19  ;;  %v4084_v29 = vsel %vm376_vm0, 0.0, %v409_v18  ;;  %v2999_v3 = vunpack.i.h.bf16 %v2997_v20  ;;  %v2998_v4 = vunpack.i.l.bf16 %v2997_v20  ;;  %v2984_v18 = vunpack.i.h.bf16 %v4032_v46 }
  0x9a   : > { %3286 = vrot.lane.b32.xlu0 %v4024_v39, %s3688_s8  ;;  %v598_v53 = vrot.slane %v4084_v29, 1  ;;  %v4120_v12 = vpack.i.bf16 %v4081_v38, %v4084_v29  ;;  %v3004_v46 = vunpack.i.h.bf16 %v4065_v11  ;;  %v2783_v11 = vunpack.c.l.bf16 %v4130_v22 }
  0x9b   : > { %v4078_v35 = vpop.permute.xlu1 %3011  ;;  %v1488_v51 = vsel %vm1484_vm4, %v3820_v33, %v2999_v3  ;;  %v1487_v52 = vsel %vm1484_vm4, %v3823_v34, %v2998_v4  ;;  %v2993_v33 = vunpack.i.l.bf16 %v4050_v60  ;;  %v1519_v34 = vsel %vm1517_vm5, %v1486_v26, %v2984_v18 }
  0x9c   : > { %v4089_v41 = vpop.permute.xlu0 %3006  ;;  %v600_v20 = vsel %vm542_vm2, %v598_v53, %v599_v54  ;;  %v1521_v3 = vsel %vm1517_vm5, %v1488_v51, %v3004_v46  ;;  %v1520_v4 = vsel %vm1517_vm5, %v1487_v52, %v3003_v30  ;;  %v1552_v57 = vsel %vm1550_vm6, %v1519_v34, %v2989_v44 }
  0x9d   : > { %3301 = vrot.lane.b32.xlu1 %v4046_v56, %s3682_s19  ;;  %v4151_v54 = vpack.i.bf16 %v602_v21, %v600_v20  ;;  %v3009_v20 = vunpack.i.h.bf16 %v4089_v41  ;;  %v3008_v21 = vunpack.i.l.bf16 %v4089_v41  ;;  %v1551_v60 = vsel %vm1550_vm6, %v1518_v58, %v2988_v45 }
  0x9e   : > { %3296 = vrot.lane.b32.xlu0 %v4076_v28, %s3688_s8  ;;  %v3013_v27 = vunpack.i.l.bf16 %v4078_v35  ;;  %v1553_v41 = vsel %vm1550_vm6, %v1520_v4, %v2993_v33  ;;  %v1554_v44 = vsel %vm1550_vm6, %v1521_v3, %v2994_v61 }
  0x9f   : > { %v4104_v59 = vpop.permute.xlu1 %3021  ;;  %v1584_v52 = vsel %vm1583_vm7, %v1551_v60, %v3008_v21 }
  0xa0   : > { %v4110_v5 = vpop.permute.xlu0 %3016 }
  0xa1   : > { %3311 = vrot.lane.b32.xlu1 %v4076_v28, %s3681_s18  ;;  %v3019_v19 = vunpack.i.h.bf16 %v4110_v5  ;;  %v3018_v18 = vunpack.i.l.bf16 %v4110_v5  ;;  %v1585_v5 = vsel %vm1583_vm7, %v1552_v57, %v3009_v20 }
  0xa2   : > { %3306 = vrot.lane.b32.xlu0 %v4024_v39, %s3681_s18 }
  0xa3   : > { %v4141_v39 = vpop.permute.xlu1 %3031  ;;  %v1617_v34 = vsel %vm1616_vm8, %v1584_v52, %v3018_v18  ;;  %v1618_v33 = vsel %vm1616_vm8, %v1585_v5, %v3019_v19 }
  0xa4   : > { %v3027_v53 = vpop.permute.xlu0 %3026  ;;  %v3034_v61 = vunpack.i.h.bf16 %v4141_v39  ;;  %v3033_v3 = vunpack.i.l.bf16 %v4141_v39  ;;  %v1586_v39 = vsel %vm1583_vm7, %v1553_v41, %v3013_v27 }
  0xa5   : > { %3321 = vrot.lane.b32.xlu1 %v4108_v0, %s3683_s20  ;;  %v3029_v46 = vunpack.i.h.bf16 %v3027_v53  ;;  %v3028_v30 = vunpack.i.l.bf16 %v3027_v53  ;;  %v3023_v53 = vunpack.i.l.bf16 %v4104_v59 }
  0xa6   : > { %3316 = vrot.lane.b32.xlu0 %v4038_v50, %s3683_s20  ;;  %v3014_v50 = vunpack.i.h.bf16 %v4078_v35  ;;  %v3024_v35 = vunpack.i.h.bf16 %v4104_v59 }
  0xa7   : > { %v3042_v13 = vpop.permute.xlu1 %3041  ;;  %v1650_v57 = vsel %vm1649_vm9, %v1617_v34, %v3028_v30  ;;  %v1651_v59 = vsel %vm1649_vm9, %v1618_v33, %v3029_v46  ;;  %v1619_v46 = vsel %vm1616_vm8, %v1586_v39, %v3023_v53  ;;  %v778_v53 = vrot.slane %v4087_v40, 2 }
  0xa8   : > { %v3037_v26 = vpop.permute.xlu0 %3036  ;;  %v3044_v20 = vunpack.i.h.bf16 %v3042_v13  ;;  %v3043_v21 = vunpack.i.l.bf16 %v3042_v13  ;;  %v1587_v18 = vsel %vm1583_vm7, %v1554_v44, %v3014_v50  ;;  %v5159_v40 = vunpack.c.l.bf16 %v4133_v23 }
  0xa9   : > { %3331 = vrot.lane.b32.xlu1 %v4112_v10, %s3684_s21  ;;  %v3039_v51 = vunpack.i.h.bf16 %v3037_v26  ;;  %v3038_v45 = vunpack.i.l.bf16 %v3037_v26  ;;  %v1620_v13 = vsel %vm1616_vm8, %v1587_v18, %v3024_v35  ;;  %v776_v35 = vrot.slane %v4081_v38, 2  ;;  %v2813_v18 = vld [vmem:[%s3800_s17 + $0x68] sm:$0xff]  }
  0xaa   : > { %3326 = vrot.lane.b32.xlu0 %v4046_v56, %s3684_s21  ;;  %v1653_v27 = vsel %vm1649_vm9, %v1620_v13, %v3034_v61 }
  0xab   : > { %v4182_v58 = vpop.permute.xlu1 %3051  ;;  %v1683_v60 = vsel %vm1682_vm10, %v1650_v57, %v3038_v45  ;;  %v1684_v19 = vsel %vm1682_vm10, %v1651_v59, %v3039_v51  ;;  %v2788_v45 = vunpack.c.h.bf16 %v4133_v23  ;;  %v1652_v51 = vsel %vm1649_vm9, %v1619_v46, %v3033_v3 }
  0xac   : > { %v3047_v4 = vpop.permute.xlu0 %3046  ;;  %v1685_v44 = vsel %vm1682_vm10, %v1652_v51, %v3043_v21  ;;  %v1686_v33 = vsel %vm1682_vm10, %v1653_v27, %v3044_v20  ;;  %v415_v59 = vrot.slane %v5159_v40, 7  ;;  %v779_v21 = vsel %vm719_vm1, %v776_v35, %v778_v53 }
  0xad   : > { %v3049_v56 = vunpack.i.h.bf16 %v3047_v4  ;;  %v3048_v26 = vunpack.i.l.bf16 %v3047_v4  ;;  %3341 = vrot.lane.b32.xlu1 %v4116_v47, %s3685_s22  ;;  %v416_v20 = vrot.slane %v2788_v45, 7 }
  0xae   : > { %3336 = vrot.lane.b32.xlu0 %v4076_v28, %s3685_s22 }
  0xaf   : > { %v4198_v5 = vpop.permute.xlu1 %3061  ;;  %v1716_v52 = vsel %vm1715_vm11, %v1683_v60, %v3048_v26  ;;  %v1717_v30 = vsel %vm1715_vm11, %v1684_v19, %v3049_v56  ;;  %v412_v56 = vrot.slane %v2783_v11, 7  ;;  %v413_v26 = vrot.slane %v2784_v55, 7 }
  0xb0   : > { %v3057_v34 = vpop.permute.xlu0 %3056  ;;  %v1748_v28 = vpack.c.bf16 %v1717_v30, %v1716_v52  ;;  %v5160_v11 = vrot.slane %v4084_v29, 2  ;;  %v4252_v52 = vsel %vm376_vm0, %v415_v59, %v416_v20  ;;  %v4255_v30 = vsel %vm376_vm0, 0.0, %v415_v59 }
  0xb1   : > { %v3059_v41 = vunpack.i.h.bf16 %v3057_v34  ;;  %v3058_v50 = vunpack.i.l.bf16 %v3057_v34  ;;  %3351 = vrot.lane.b32.xlu1 %v4120_v12, %s3686_s23  ;;  %v4240_v60 = vsel %vm376_vm0, %v412_v56, %v413_v26  ;;  %v4243_v23 = vsel %vm376_vm0, 0.0, %v412_v56 }
  0xb2   : > { %3346 = vrot.lane.b32.xlu0 %v4108_v0, %s3686_s23  ;;  %2858 = vmatprep.mubr.msk.bf16.mxu0 %vm1784_vm12, %v1748_v28  ;;  %v777_v22 = vsel %vm719_vm1, %v5160_v11, %v776_v35  ;;  %5161 = vst [vmem:[#allocation5_spill] sm:$0xff] %v4240_v60  ;;  %5162 = vst [vmem:[#allocation6_spill] sm:$0xff] %v4243_v23  ;;  %v505_v19 = vsel %vm376_vm0, %v413_v26, 0.0  ;;  %v4258_v46 = vsel %vm376_vm0, %v416_v20, 0.0  ;;  %v603_v34 = vrot.slane %v4243_v23, 1 }
  0xb3   : > { %v1718_v61 = vsel %vm1715_vm11, %v1685_v44, %v3058_v50  ;;  %v1719_v3 = vsel %vm1715_vm11, %v1686_v33, %v3059_v41  ;;  %v4218_v4 = vpop.permute.xlu1 %3071  ;;  %v4262_v13 = vpack.i.bf16 %v779_v21, %v777_v22  ;;  %v604_v28 = vrot.slane %v4240_v60, 1 }
  0xb4   : > { %v4224_v0 = vpop.permute.xlu0 %3066  ;;  %v1749_v57 = vpack.c.bf16 %v1719_v3, %v1718_v61  ;;  %v606_v45 = vrot.slane %v505_v19, 1  ;;  %v780_v51 = vrot.slane %v4243_v23, 2  ;;  %v781_v27 = vrot.slane %v4240_v60, 2 }
  0xb5   : > { %3361 = vrot.lane.b32.xlu1 %v4151_v54, %s3687_s29  ;;  %v2791_v41 = vunpack.c.l.bf16 %v2813_v18  ;;  %v783_v44 = vrot.slane %v505_v19, 2  ;;  %v608_v33 = vrot.slane %v4255_v30, 1  ;;  %v609_v35 = vrot.slane %v4252_v52, 1 }
  0xb6   : > { %3356 = vrot.lane.b32.xlu0 %v4112_v10, %s3687_s29  ;;  %2859 = vmatmul.mubr.msk.bf16.vlgmr.msra.gmra.mxu0 %vm1784_vm12, %v1749_v57  ;;  %v611_v53 = vrot.slane %v4258_v46, 1  ;;  %v605_v61 = vsel %vm542_vm2, %v603_v34, %v604_v28  ;;  %v607_v3 = vsel %vm542_vm2, %v604_v28, %v606_v45  ;;  %v4285_v26 = vpack.i.bf16 %v4240_v60, %v4243_v23  ;;  %v4306_v45 = vld [vmem:[%s3800_s17 + $0x70] sm:$0xff]  }
  0xb7   : > { %v4236_v55 = vpop.permute.xlu1 %3081  ;;  %v2792_v57 = vunpack.c.h.bf16 %v2813_v18  ;;  %v4287_v40 = vrot.slane %v2791_v41, 7  ;;  %v782_v20 = vsel %vm719_vm1, %v780_v51, %v781_v27  ;;  %v784_v11 = vsel %vm719_vm1, %v781_v27, %v783_v44 }
  0xb8   : > { %v4246_v39 = vpop.permute.xlu0 %3076  ;;  %v610_v22 = vsel %vm542_vm2, %v608_v33, %v609_v35  ;;  %v612_v21 = vsel %vm542_vm2, %v609_v35, %v611_v53  ;;  %v3064_v19 = vunpack.i.h.bf16 %v4198_v5  ;;  %v3063_v34 = vunpack.i.l.bf16 %v4198_v5 }
  0xb9   : > { %3371 = vrot.lane.b32.xlu1 %v4112_v10, %s3682_s19  ;;  %v4299_v18 = vpack.i.bf16 %v607_v3, %v605_v61  ;;  %v4303_v28 = vpack.i.bf16 %v4252_v52, %v4255_v30  ;;  %v3054_v51 = vunpack.i.h.bf16 %v4182_v58  ;;  %v3053_v27 = vunpack.i.l.bf16 %v4182_v58 }
  0xba   : > { %3366 = vrot.lane.b32.xlu0 %v4116_v47, %s3688_s8  ;;  %v3074_v41 = vunpack.i.h.bf16 %v4218_v4  ;;  %v3073_v44 = vunpack.i.l.bf16 %v4218_v4  ;;  %v3069_v5 = vunpack.i.h.bf16 %v4224_v0  ;;  %v3068_v33 = vunpack.i.l.bf16 %v4224_v0 }
  0xbb   : > { %v4266_v10 = vpop.permute.xlu1 %3091  ;;  %v4318_v53 = vpack.i.bf16 %v784_v11, %v782_v20  ;;  %v4320_v61 = vpack.i.bf16 %v612_v21, %v610_v22  ;;  %v3084_v3 = vunpack.i.h.bf16 %v4236_v55  ;;  %v3083_v58 = vunpack.i.l.bf16 %v4236_v55 }
  0xbc   : > { %v4270_v50 = vpop.permute.xlu0 %3086  ;;  %v4324_v60 = vrot.slane %v2792_v57, 7  ;;  %v2795_v4 = vunpack.c.l.bf16 %v4306_v45  ;;  %v1491_v0 = vsel %vm1484_vm4, %v3855_v63, %v3063_v34  ;;  %v3079_v20 = vunpack.i.h.bf16 %v4246_v39 }
  0xbd   : > { %3381 = vrot.lane.b32.xlu1 %v4151_v54, %s3682_s19  ;;  %v3078_v11 = vunpack.i.l.bf16 %v4246_v39  ;;  %v1490_v55 = vsel %vm1484_vm4, %v3814_v31, %v3054_v51  ;;  %v1489_v57 = vsel %vm1484_vm4, %v3817_v32, %v3053_v27  ;;  %v1524_v22 = vsel %vm1517_vm5, %v1491_v0, %v3073_v44 }
  0xbe   : > { %3376 = vrot.lane.b32.xlu0 %v4262_v13, %s3688_s8  ;;  %v1523_v63 = vsel %vm1517_vm5, %v1490_v55, %v3069_v5  ;;  %v1522_v39 = vsel %vm1517_vm5, %v1489_v57, %v3068_v33  ;;  %v3089_v21 = vunpack.i.h.bf16 %v4270_v50  ;;  %v1557_v31 = vsel %vm1550_vm6, %v1524_v22, %v3083_v58 }
  0xbf   : > { %v4281_v56 = vpop.permute.xlu1 %3101  ;;  %v1556_v44 = vsel %vm1550_vm6, %v1523_v63, %v3079_v20  ;;  %v3093_v58 = vunpack.i.l.bf16 %v4266_v10 }
  0xc0   : > { %v4289_v59 = vpop.permute.xlu0 %3096  ;;  %v1589_v0 = vsel %vm1583_vm7, %v1556_v44, %v3089_v21  ;;  %v3104_v20 = vunpack.i.h.bf16 %v4281_v56 }
  0xc1   : > { %3391 = vrot.lane.b32.xlu1 %v4262_v13, %s3681_s18  ;;  %v3099_v51 = vunpack.i.h.bf16 %v4289_v59  ;;  %v3098_v27 = vunpack.i.l.bf16 %v4289_v59 }
  0xc2   : > { %3386 = vrot.lane.b32.xlu0 %v4116_v47, %s3681_s18  ;;  %v1492_v47 = vsel %vm1484_vm4, %v3852_v62, %v3064_v19  ;;  %v3088_v19 = vunpack.i.l.bf16 %v4270_v50  ;;  %v3094_v50 = vunpack.i.h.bf16 %v4266_v10 }
  0xc3   : > { %v4316_v35 = vpop.permute.xlu1 %3111  ;;  %v1525_v62 = vsel %vm1517_vm5, %v1492_v47, %v3074_v41  ;;  %v1622_v57 = vsel %vm1616_vm8, %v1589_v0, %v3099_v51 }
  0xc4   : > { %v3107_v23 = vpop.permute.xlu0 %3106  ;;  %v1558_v32 = vsel %vm1550_vm6, %v1525_v62, %v3084_v3  ;;  %v3114_v10 = vunpack.i.h.bf16 %v4316_v35  ;;  %v3113_v22 = vunpack.i.l.bf16 %v4316_v35  ;;  %v1590_v35 = vsel %vm1583_vm7, %v1557_v31, %v3093_v58 }
  0xc5   : > { %3401 = vrot.lane.b32.xlu1 %v4285_v26, %s3683_s20  ;;  %v3109_v5 = vunpack.i.h.bf16 %v3107_v23  ;;  %v3108_v33 = vunpack.i.l.bf16 %v3107_v23  ;;  %v3103_v23 = vunpack.i.l.bf16 %v4281_v56 }
  0xc6   : > { %3396 = vrot.lane.b32.xlu0 %v4120_v12, %s3683_s20  ;;  %v1555_v12 = vsel %vm1550_vm6, %v1522_v39, %v3078_v11 }
  0xc7   : > { %v3122_v34 = vpop.permute.xlu1 %3121  ;;  %v1588_v59 = vsel %vm1583_vm7, %v1555_v12, %v3088_v19  ;;  %v1655_v63 = vsel %vm1649_vm9, %v1622_v57, %v3109_v5 }
  0xc8   : > { %v3117_v41 = vpop.permute.xlu0 %3116  ;;  %v1621_v55 = vsel %vm1616_vm8, %v1588_v59, %v3098_v27  ;;  %v3124_v56 = vunpack.i.h.bf16 %v3122_v34  ;;  %v3123_v19 = vunpack.i.l.bf16 %v3122_v34 }
  0xc9   : > { %3411 = vrot.lane.b32.xlu1 %v4299_v18, %s3684_s21  ;;  %v3119_v47 = vunpack.i.h.bf16 %v3117_v41  ;;  %v3118_v3 = vunpack.i.l.bf16 %v3117_v41  ;;  %v1591_v41 = vsel %vm1583_vm7, %v1558_v32, %v3094_v50 }
  0xca   : > { %3406 = vrot.lane.b32.xlu0 %v4151_v54, %s3684_s21  ;;  %v1654_v54 = vsel %vm1649_vm9, %v1621_v55, %v3108_v33  ;;  %v1623_v33 = vsel %vm1616_vm8, %v1590_v35, %v3103_v23  ;;  %v1624_v34 = vsel %vm1616_vm8, %v1591_v41, %v3104_v20  ;;  %v785_v20 = vrot.slane %v4255_v30, 2 }
  0xcb   : > { %v4363_v11 = vpop.permute.xlu1 %3131  ;;  %v1687_v27 = vsel %vm1682_vm10, %v1654_v54, %v3118_v3  ;;  %v1688_v51 = vsel %vm1682_vm10, %v1655_v63, %v3119_v47  ;;  %v2796_v47 = vunpack.c.h.bf16 %v4306_v45  ;;  %v1657_v31 = vsel %vm1649_vm9, %v1624_v34, %v3114_v10 }
  0xcc   : > { %v3127_v62 = vpop.permute.xlu0 %3126  ;;  %v1690_v0 = vsel %vm1682_vm10, %v1657_v31, %v3124_v56  ;;  %v786_v10 = vrot.slane %v4252_v52, 2  ;;  %v4413_v63 = vsel %vm376_vm0, 0.0, %v4287_v40 }
  0xcd   : > { %v3129_v39 = vunpack.i.h.bf16 %v3127_v62  ;;  %v3128_v21 = vunpack.i.l.bf16 %v3127_v62  ;;  %3421 = vrot.lane.b32.xlu1 %v4318_v53, %s3685_s22  ;;  %v613_v45 = vrot.slane %v4413_v63, 1 }
  0xce   : > { %3416 = vrot.lane.b32.xlu0 %v4262_v13, %s3685_s22  ;;  %v1656_v13 = vsel %vm1649_vm9, %v1623_v33, %v3113_v22  ;;  %v788_v22 = vrot.slane %v4258_v46, 2  ;;  %v507_v46 = vsel %vm376_vm0, %v4324_v60, 0.0 }
  0xcf   : > { %v1720_v12 = vsel %vm1715_vm11, %v1687_v27, %v3128_v21  ;;  %v1721_v44 = vsel %vm1715_vm11, %v1688_v51, %v3129_v39  ;;  %v4381_v5 = vpop.permute.xlu1 %3141  ;;  %v1689_v50 = vsel %vm1682_vm10, %v1656_v13, %v3123_v19  ;;  %v421_v39 = vrot.slane %v2795_v4, 7 }
  0xd0   : > { %v1750_v3 = vpack.c.bf16 %v1721_v44, %v1720_v12  ;;  %v3137_v59 = vpop.permute.xlu0 %3136  ;;  %v422_v21 = vrot.slane %v2796_v47, 7  ;;  %v787_v19 = vsel %vm719_vm1, %v785_v20, %v786_v10  ;;  %v789_v27 = vsel %vm719_vm1, %v786_v10, %v788_v22 }
  0xd1   : > { %v3139_v58 = vunpack.i.h.bf16 %v3137_v59  ;;  %v3138_v32 = vunpack.i.l.bf16 %v3137_v59  ;;  %3431 = vrot.lane.b32.xlu1 %v4303_v28, %s3686_s23  ;;  %v616_v51 = vrot.slane %v507_v46, 1  ;;  %v4443_v12 = vpack.i.bf16 %v789_v27, %v787_v19 }
  0xd2   : > { %3426 = vrot.lane.b32.xlu0 %v4285_v26, %s3686_s23  ;;  %2862 = vmatprep.mubr.msk.bf16.mxu0 %vm1784_vm12, %v1750_v3  ;;  %v4409_v26 = vsel %vm376_vm0, %v4287_v40, %v4324_v60  ;;  %v4433_v35 = vsel %vm376_vm0, %v421_v39, %v422_v21  ;;  %v4436_v60 = vsel %vm376_vm0, 0.0, %v421_v39  ;;  %v4439_v41 = vsel %vm376_vm0, %v422_v21, 0.0 }
  0xd3   : > { %v1723_v23 = vsel %vm1715_vm11, %v1690_v0, %v3139_v58  ;;  %v1722_v55 = vsel %vm1715_vm11, %v1689_v50, %v3138_v32  ;;  %v4398_v57 = vpop.permute.xlu1 %3151  ;;  %v614_v4 = vrot.slane %v4409_v26, 1  ;;  %v790_v44 = vrot.slane %v4413_v63, 2 }
  0xd4   : > { %v1751_v62 = vpack.c.bf16 %v1723_v23, %v1722_v55  ;;  %v4402_v54 = vpop.permute.xlu0 %3146  ;;  %v791_v33 = vrot.slane %v4409_v26, 2  ;;  %v618_v59 = vrot.slane %v4436_v60, 1  ;;  %v619_v47 = vrot.slane %v4433_v35, 1 }
  0xd5   : > { %3441 = vrot.lane.b32.xlu1 %v4320_v61, %s3687_s29  ;;  %v621_v13 = vrot.slane %v4439_v41, 1  ;;  %v615_v31 = vsel %vm542_vm2, %v613_v45, %v614_v4  ;;  %v617_v58 = vsel %vm542_vm2, %v614_v4, %v616_v51  ;;  %v4466_v20 = vpack.i.bf16 %v4409_v26, %v4413_v63 }
  0xd6   : > { %3436 = vrot.lane.b32.xlu0 %v4299_v18, %s3687_s29  ;;  %2863 = vmatmul.mubr.msk.bf16.gmra.mxu0 %vm1784_vm12, %v1751_v62  ;;  %v792_v32 = vsel %vm719_vm1, %v790_v44, %v791_v33  ;;  %v4468_v55 = vpack.i.bf16 %v617_v58, %v615_v31  ;;  %v620_v10 = vsel %vm542_vm2, %v618_v59, %v619_v47  ;;  %v3144_v62 = vunpack.i.h.bf16 %v4381_v5 }
  0xd7   : > { %v4422_v56 = vpop.permute.xlu1 %3161  ;;  %v622_v22 = vsel %vm542_vm2, %v619_v47, %v621_v13  ;;  %v3143_v39 = vunpack.i.l.bf16 %v4381_v5  ;;  %v3134_v19 = vunpack.i.h.bf16 %v4363_v11  ;;  %v3133_v27 = vunpack.i.l.bf16 %v4363_v11 }
  0xd8   : > { %v4426_v40 = vpop.permute.xlu0 %3156  ;;  %v3154_v45 = vunpack.i.h.bf16 %v4398_v57  ;;  %v3153_v4 = vunpack.i.l.bf16 %v4398_v57  ;;  %v3149_v5 = vunpack.i.h.bf16 %v4402_v54  ;;  %v3148_v51 = vunpack.i.l.bf16 %v4402_v54 }
  0xd9   : > { %3451 = vrot.lane.b32.xlu1 %v4299_v18, %s3682_s19  ;;  %v793_v18 = vrot.slane %v507_v46, 2  ;;  %v4479_v46 = vld [vmem:[%s3800_s17 + $0x78] sm:$0xff]   ;;  %v3164_v11 = vunpack.i.h.bf16 %v4422_v56  ;;  %v3163_v59 = vunpack.i.l.bf16 %v4422_v56  ;;  %v1496_v54 = vsel %vm1484_vm4, %v3904_v48, %v3144_v62  ;;  %s2736_s17 = sshll.u32 %s3752_s28, 12  ;;  %s5106_s28 = scalar_lea.sflag [#allocation3], %s269_s13 }
  0xda   : > { %3446 = vrot.lane.b32.xlu0 %v4318_v53, %s3688_s8  ;;  %v2799_v47 = vunpack.c.l.bf16 %v4479_v46  ;;  %v1495_v13 = vsel %vm1484_vm4, %v3907_v49, %v3143_v39  ;;  %v3159_v31 = vunpack.i.h.bf16 %v4426_v40  ;;  %v3158_v58 = vunpack.i.l.bf16 %v4426_v40 }
  0xdb   : > { %v4447_v34 = vpop.permute.xlu1 %3171  ;;  %v794_v50 = vsel %vm719_vm1, %v791_v33, %v793_v18  ;;  %v4493_v33 = vpack.i.bf16 %v4433_v35, %v4436_v60  ;;  %v4495_v18 = vpack.i.bf16 %v622_v22, %v620_v10  ;;  %v1494_v56 = vsel %vm1484_vm4, %v3880_v24, %v3134_v19 }
  0xdc   : > { %v4449_v3 = vpop.permute.xlu0 %3166  ;;  %v4476_v21 = vpack.i.bf16 %v794_v50, %v792_v32  ;;  %v1493_v32 = vsel %vm1484_vm4, %v3883_v25, %v3133_v27  ;;  %v1528_v50 = vsel %vm1517_vm5, %v1495_v13, %v3153_v4  ;;  %v1529_v48 = vsel %vm1517_vm5, %v1496_v54, %v3154_v45 }
  0xdd   : > { %3461 = vrot.lane.b32.xlu1 %v4320_v61, %s3682_s19  ;;  %v1527_v49 = vsel %vm1517_vm5, %v1494_v56, %v3149_v5  ;;  %v1526_v40 = vsel %vm1517_vm5, %v1493_v32, %v3148_v51  ;;  %v3169_v10 = vunpack.i.h.bf16 %v4449_v3  ;;  %v3168_v22 = vunpack.i.l.bf16 %v4449_v3 }
  0xde   : > { %3456 = vrot.lane.b32.xlu0 %v4443_v12, %s3688_s8  ;;  %v1561_v24 = vsel %vm1550_vm6, %v1528_v50, %v3163_v59  ;;  %v1562_v25 = vsel %vm1550_vm6, %v1529_v48, %v3164_v11  ;;  %v1559_v45 = vsel %vm1550_vm6, %v1526_v40, %v3158_v58  ;;  %v3174_v51 = vunpack.i.h.bf16 %v4447_v34 }
  0xdf   : > { %v4462_v0 = vpop.permute.xlu1 %3181  ;;  %v3173_v3 = vunpack.i.l.bf16 %v4447_v34 }
  0xe0   : > { %v3177_v23 = vpop.permute.xlu0 %3176  ;;  %v3184_v13 = vunpack.i.h.bf16 %v4462_v0 }
  0xe1   : > { %3471 = vrot.lane.b32.xlu1 %v4443_v12, %s3681_s18  ;;  %v3179_v39 = vunpack.i.h.bf16 %v3177_v23  ;;  %v3178_v19 = vunpack.i.l.bf16 %v3177_v23  ;;  %v1592_v23 = vsel %vm1583_vm7, %v1559_v45, %v3168_v22 }
  0xe2   : > { %3466 = vrot.lane.b32.xlu0 %v4318_v53, %s3681_s18  ;;  %v2800_v53 = vunpack.c.h.bf16 %v4479_v46 }
  0xe3   : > { %v4489_v44 = vpop.permute.xlu1 %3191  ;;  %v1625_v58 = vsel %vm1616_vm8, %v1592_v23, %v3178_v19  ;;  %v1595_v19 = vsel %vm1583_vm7, %v1562_v25, %v3174_v51 }
  0xe4   : > { %v3187_v57 = vpop.permute.xlu0 %3186  ;;  %v3194_v34 = vunpack.i.h.bf16 %v4489_v44  ;;  %v3193_v32 = vunpack.i.l.bf16 %v4489_v44  ;;  %v1594_v44 = vsel %vm1583_vm7, %v1561_v24, %v3173_v3 }
  0xe5   : > { %3481 = vrot.lane.b32.xlu1 %v4466_v20, %s3683_s20  ;;  %v3189_v4 = vunpack.i.h.bf16 %v3187_v57  ;;  %v3188_v5 = vunpack.i.l.bf16 %v3187_v57  ;;  %v3183_v57 = vunpack.i.l.bf16 %v4462_v0 }
  0xe6   : > { %3476 = vrot.lane.b32.xlu0 %v4303_v28, %s3683_s20  ;;  %v1560_v28 = vsel %vm1550_vm6, %v1527_v49, %v3159_v31 }
  0xe7   : > { %v3202_v62 = vpop.permute.xlu1 %3201  ;;  %v1593_v11 = vsel %vm1583_vm7, %v1560_v28, %v3169_v10 }
  0xe8   : > { %v3197_v27 = vpop.permute.xlu0 %3196  ;;  %v1626_v56 = vsel %vm1616_vm8, %v1593_v11, %v3179_v39  ;;  %v3204_v0 = vunpack.i.h.bf16 %v3202_v62  ;;  %v3203_v10 = vunpack.i.l.bf16 %v3202_v62  ;;  %v1628_v62 = vsel %vm1616_vm8, %v1595_v19, %v3184_v13 }
  0xe9   : > { %3491 = vrot.lane.b32.xlu1 %v4468_v55, %s3684_s21  ;;  %v3199_v54 = vunpack.i.h.bf16 %v3197_v27  ;;  %v3198_v59 = vunpack.i.l.bf16 %v3197_v27  ;;  %v1659_v48 = vsel %vm1649_vm9, %v1626_v56, %v3189_v4  ;;  %v1627_v4 = vsel %vm1616_vm8, %v1594_v44, %v3183_v57 }
  0xea   : > { %3486 = vrot.lane.b32.xlu0 %v4320_v61, %s3684_s21  ;;  %v1658_v61 = vsel %vm1649_vm9, %v1625_v58, %v3188_v5  ;;  %v1661_v24 = vsel %vm1649_vm9, %v1628_v62, %v3194_v34  ;;  %v424_v11 = vrot.slane %v2799_v47, 7  ;;  %v425_v13 = vrot.slane %v2800_v53, 7 }
  0xeb   : > { %v4535_v31 = vpop.permute.xlu1 %3211  ;;  %v1691_v22 = vsel %vm1682_vm10, %v1658_v61, %v3198_v59  ;;  %v1692_v39 = vsel %vm1682_vm10, %v1659_v48, %v3199_v54  ;;  %v795_v54 = vrot.slane %v4436_v60, 2  ;;  %v1694_v23 = vsel %vm1682_vm10, %v1661_v24, %v3204_v0 }
  0xec   : > { %v3207_v50 = vpop.permute.xlu0 %3206  ;;  %v796_v34 = vrot.slane %v4433_v35, 2  ;;  %v426_v46 = vsel %vm376_vm0, %v424_v11, %v425_v13  ;;  %v492_v47 = vsel %vm376_vm0, 0.0, %v424_v11  ;;  %v509_v53 = vsel %vm376_vm0, %v425_v13, 0.0 }
  0xed   : > { %v3209_v49 = vunpack.i.h.bf16 %v3207_v50  ;;  %v3208_v40 = vunpack.i.l.bf16 %v3207_v50  ;;  %3501 = vrot.lane.b32.xlu1 %v4476_v21, %s3685_s22  ;;  %v995_v0 = vrot.slane %v426_v46, 1  ;;  %v1096_v44 = vrot.slane %v426_v46, 2 }
  0xee   : > { %3496 = vrot.lane.b32.xlu0 %v4443_v12, %s3685_s22  ;;  %v1660_v12 = vsel %vm1649_vm9, %v1627_v4, %v3193_v32  ;;  %v798_v32 = vrot.slane %v4439_v41, 2  ;;  %v797_v41 = vsel %vm719_vm1, %v795_v54, %v796_v34  ;;  %v1098_v19 = vrot.slane %v509_v53, 2 }
  0xef   : > { %v1724_v27 = vsel %vm1715_vm11, %v1691_v22, %v3208_v40  ;;  %v1725_v45 = vsel %vm1715_vm11, %v1692_v39, %v3209_v49  ;;  %v4553_v28 = vpop.permute.xlu1 %3221  ;;  %v1693_v51 = vsel %vm1682_vm10, %v1660_v12, %v3203_v10  ;;  %v994_v40 = vrot.slane %v492_v47, 1 }
  0xf0   : > { %v1752_v5 = vpack.c.bf16 %v1725_v45, %v1724_v27  ;;  %v3217_v59 = vpop.permute.xlu0 %3216  ;;  %v799_v48 = vsel %vm719_vm1, %v796_v34, %v798_v32  ;;  %v997_v10 = vrot.slane %v509_v53, 1  ;;  %v1095_v39 = vrot.slane %v492_v47, 2 }
  0xf1   : > { %v3219_v3 = vunpack.i.h.bf16 %v3217_v59  ;;  %v3218_v25 = vunpack.i.l.bf16 %v3217_v59  ;;  %3511 = vrot.lane.b32.xlu1 %v4493_v33, %s3686_s23  ;;  %v4597_v22 = vpack.i.bf16 %v799_v48, %v797_v41  ;;  %v4613_v12 = vpack.i.bf16 %v426_v46, %v492_v47 }
  0xf2   : > { %3506 = vrot.lane.b32.xlu0 %v4466_v20, %s3686_s23  ;;  %2866 = vmatprep.mubr.msk.bf16.mxu0 %vm1784_vm12, %v1752_v5  ;;  %v998_v4 = vsel %vm542_vm2, %v995_v0, %v997_v10  ;;  %v1097_v62 = vsel %vm719_vm1, %v1095_v39, %v1096_v44  ;;  %v1099_v5 = vsel %vm719_vm1, %v1096_v44, %v1098_v19  ;;  %v3213_v11 = vunpack.i.l.bf16 %v4535_v31 }
  0xf3   : > { %v1727_v57 = vsel %vm1715_vm11, %v1694_v23, %v3219_v3  ;;  %v1726_v58 = vsel %vm1715_vm11, %v1693_v51, %v3218_v25  ;;  %v4573_v56 = vpop.permute.xlu1 %3231  ;;  %v3224_v3 = vunpack.i.h.bf16 %v4553_v28  ;;  %v3223_v25 = vunpack.i.l.bf16 %v4553_v28 }
  0xf4   : > { %v1753_v50 = vpack.c.bf16 %v1727_v57, %v1726_v58  ;;  %v4577_v20 = vpop.permute.xlu0 %3226  ;;  %v4621_v51 = vpack.i.bf16 %v1099_v5, %v1097_v62  ;;  %v3214_v23 = vunpack.i.h.bf16 %v4535_v31  ;;  %v3234_v13 = vunpack.i.h.bf16 %v4573_v56  ;;  %v2188_v31 = vld [vmem:[%s5151_s4] sm:$0xf] }
  0xf5   : > { %3521 = vrot.lane.b32.xlu1 %v4495_v18, %s3687_s29  ;;  %v3233_v57 = vunpack.i.l.bf16 %v4573_v56  ;;  %v3229_v58 = vunpack.i.h.bf16 %v4577_v20  ;;  %v3228_v28 = vunpack.i.l.bf16 %v4577_v20  ;;  %v3590_v32 = vpack.i.bf16 %v3779_v1, %v3784_v2  ;;  %2925 = vmatprep.subr.msk.bf16.mxu1 %vm2237_vm13, %v2188_v31 }
  0xf6   : > { %3516 = vrot.lane.b32.xlu0 %v4468_v55, %s3687_s29  ;;  %2867 = vmatmul.mubr.msk.bf16.gmra.mxu0 %vm1784_vm12, %v1753_v50  ;;  %v1500_v20 = vsel %vm1484_vm4, %v3965_v42, %v3224_v3  ;;  %v1499_v47 = vsel %vm1484_vm4, %v3968_v43, %v3223_v25  ;;  %v1497_v48 = vsel %vm1484_vm4, %v3944_v17, %v3213_v11 }
  0xf7   : > { %v4587_v61 = vpop.permute.xlu1 %3241  ;;  %v1533_v42 = vsel %vm1517_vm5, %v1500_v20, %v3234_v13 }
  0xf8   : > { %v4591_v49 = vpop.permute.xlu0 %3236  ;;  %v3244_v50 = vunpack.i.h.bf16 %v4587_v61  ;;  %v3243_v56 = vunpack.i.l.bf16 %v4587_v61  ;;  %v1498_v61 = vsel %vm1484_vm4, %v3941_v16, %v3214_v23 }
  0xf9   : > { %3531 = vrot.lane.b32.xlu1 %v4468_v55, %s3682_s19  ;;  %v996_v55 = vsel %vm542_vm2, %v994_v40, %v995_v0  ;;  %v3239_v53 = vunpack.i.h.bf16 %v4591_v49  ;;  %v3238_v41 = vunpack.i.l.bf16 %v4591_v49  ;;  %v1532_v40 = vsel %vm1517_vm5, %v1499_v47, %v3233_v57 }
  0xfa   : > { %3526 = vrot.lane.b32.xlu0 %v4476_v21, %s3688_s8  ;;  %v4615_v24 = vpack.i.bf16 %v998_v4, %v996_v55  ;;  %v1531_v43 = vsel %vm1517_vm5, %v1498_v61, %v3229_v58  ;;  %v1530_v49 = vsel %vm1517_vm5, %v1497_v48, %v3228_v28  ;;  %v1565_v16 = vsel %vm1550_vm6, %v1532_v40, %v3243_v56 }
  0xfb   : > { %v4599_v27 = vpop.permute.xlu1 %3251  ;;  %v1566_v17 = vsel %vm1550_vm6, %v1533_v42, %v3244_v50  ;;  %v1563_v4 = vsel %vm1550_vm6, %v1530_v49, %v3238_v41 }
  0xfc   : > { %v4601_v45 = vpop.permute.xlu0 %3246  ;;  %v3254_v3 = vunpack.i.h.bf16 %v4599_v27 }
  0xfd   : > { %3541 = vrot.lane.b32.xlu1 %v4495_v18, %s3682_s19  ;;  %v3249_v0 = vunpack.i.h.bf16 %v4601_v45  ;;  %v3248_v10 = vunpack.i.l.bf16 %v4601_v45  ;;  %v3253_v45 = vunpack.i.l.bf16 %v4599_v27  ;;  %s2622_s19 = sshll.u32 %s4993_s9, 4  ;;  %s5101_s19 = int_to_ptr.vmem [resolvable:$true] %s2622_s19 }
  0xfe   : > { %3536 = vrot.lane.b32.xlu0 %v4597_v22, %s3688_s8  ;;  %v1599_v61 = vsel %vm1583_vm7, %v1566_v17, %v3254_v3 }
  0xff   : > { %v4611_v59 = vpop.permute.xlu1 %3261 }
 0x100   : > { %v3257_v54 = vpop.permute.xlu0 %3256  ;;  %v3264_v13 = vunpack.i.h.bf16 %v4611_v59  ;;  %v3263_v57 = vunpack.i.l.bf16 %v4611_v59 }
 0x101   : > { %3551 = vrot.lane.b32.xlu1 %v4597_v22, %s3681_s18  ;;  %v3259_v44 = vunpack.i.h.bf16 %v3257_v54  ;;  %v3258_v19 = vunpack.i.l.bf16 %v3257_v54  ;;  %v1596_v54 = vsel %vm1583_vm7, %v1563_v4, %v3248_v10 }
 0x102   : > { %3546 = vrot.lane.b32.xlu0 %v4476_v21, %s3681_s18  ;;  %v2239_v21 = vsel %vm2237_vm13, %v2188_v31, 0  ;;  %v1632_v49 = vsel %vm1616_vm8, %v1599_v61, %v3264_v13 }
 0x103   : > { %v4631_v34 = vpop.permute.xlu1 %3271  ;;  %2891 = vmatpush3.bf16.msra.mxu1 %v2239_v21  ;;  %v1629_v28 = vsel %vm1616_vm8, %v1596_v54, %v3258_v19 }
 0x104   : > { %v3267_v46 = vpop.permute.xlu0 %3266  ;;  %v3274_v27 = vunpack.i.h.bf16 %v4631_v34  ;;  %v3273_v50 = vunpack.i.l.bf16 %v4631_v34  ;;  %v1598_v34 = vsel %vm1583_vm7, %v1565_v16, %v3253_v45 }
 0x105   : > { %3561 = vrot.lane.b32.xlu1 %v4613_v12, %s3683_s20  ;;  %v3269_v62 = vunpack.i.h.bf16 %v3267_v46  ;;  %v3268_v5 = vunpack.i.l.bf16 %v3267_v46 }
 0x106   : > { %3556 = vrot.lane.b32.xlu0 %v4493_v33, %s3683_s20  ;;  %v1564_v33 = vsel %vm1550_vm6, %v1531_v43, %v3239_v53  ;;  %v1631_v43 = vsel %vm1616_vm8, %v1598_v34, %v3263_v57 }
 0x107   : > { %v3282_v39 = vpop.permute.xlu1 %3281  ;;  %v1597_v11 = vsel %vm1583_vm7, %v1564_v33, %v3249_v0 }
 0x108   : > { %v3277_v55 = vpop.permute.xlu0 %3276  ;;  %v1630_v31 = vsel %vm1616_vm8, %v1597_v11, %v3259_v44  ;;  %v3284_v59 = vunpack.i.h.bf16 %v3282_v39  ;;  %v3283_v47 = vunpack.i.l.bf16 %v3282_v39  ;;  %v1664_v39 = vsel %vm1649_vm9, %v1631_v43, %v3273_v50 }
 0x109   : > { %3571 = vrot.lane.b32.xlu1 %v4615_v24, %s3684_s21  ;;  %v3279_v25 = vunpack.i.h.bf16 %v3277_v55  ;;  %v3278_v23 = vunpack.i.l.bf16 %v3277_v55  ;;  %v1663_v46 = vsel %vm1649_vm9, %v1630_v31, %v3269_v62  ;;  %v1665_v44 = vsel %vm1649_vm9, %v1632_v49, %v3274_v27 }
 0x10a   : > { %3566 = vrot.lane.b32.xlu0 %v4495_v18, %s3684_s21  ;;  %v1662_v18 = vsel %vm1649_vm9, %v1629_v28, %v3268_v5  ;;  %v1697_v16 = vsel %vm1682_vm10, %v1664_v39, %v3283_v47  ;;  %v1698_v17 = vsel %vm1682_vm10, %v1665_v44, %v3284_v59 }
 0x10b   : > { %v4674_v58 = vpop.permute.xlu1 %3291  ;;  %v1695_v53 = vsel %vm1682_vm10, %v1662_v18, %v3278_v23  ;;  %v1696_v41 = vsel %vm1682_vm10, %v1663_v46, %v3279_v25 }
 0x10c   : > { %v3287_v56 = vpop.permute.xlu0 %3286  ;;  %v3293_v23 = vunpack.i.l.bf16 %v4674_v58 }
 0x10d   : > { %v3289_v21 = vunpack.i.h.bf16 %v3287_v56  ;;  %v3288_v20 = vunpack.i.l.bf16 %v3287_v56  ;;  %3581 = vrot.lane.b32.xlu1 %v4621_v51, %s3685_s22 }
 0x10e   : > { %3576 = vrot.lane.b32.xlu0 %v4597_v22, %s3685_s22  ;;  %s5099_s22 = scalar_lea.hbm %s5154_s7, %s2736_s17 }
 0x10f   : > { %v1728_v48 = vsel %vm1715_vm11, %v1695_v53, %v3288_v20  ;;  %v1729_v40 = vsel %vm1715_vm11, %v1696_v41, %v3289_v21  ;;  %v3302_v42 = vpop.permute.xlu1 %3301 }
 0x110   : > { %v1754_v0 = vpack.c.bf16 %v1729_v40, %v1728_v48  ;;  %v3297_v10 = vpop.permute.xlu0 %3296  ;;  %v3303_v25 = vunpack.i.l.bf16 %v3302_v42 }
 0x111   : > { %v3299_v22 = vunpack.i.h.bf16 %v3297_v10  ;;  %v3298_v19 = vunpack.i.l.bf16 %v3297_v10  ;;  %3591 = vrot.lane.b32.xlu1 %v3590_v32, %s3686_s23 }
 0x112   : > { %3586 = vrot.lane.b32.xlu0 %v4613_v12, %s3686_s23  ;;  %2870 = vmatprep.mubr.msk.bf16.mxu0 %vm1784_vm12, %v1754_v0  ;;  %v1503_v50 = vsel %vm1484_vm4, %v4020_v37, %v3303_v25  ;;  %s3618_s23 = scalar_lea.vmem %s5101_s19, 4096 }
 0x113   : > { %v1731_v55 = vsel %vm1715_vm11, %v1698_v17, %v3299_v22  ;;  %v1730_v4 = vsel %vm1715_vm11, %v1697_v16, %v3298_v19  ;;  %v3312_v33 = vpop.permute.xlu1 %3311  ;;  %p3619_p11 = scmp.ne.s32.totalorder %s5101_s19, %s3618_s23 }
 0x114   : > { %v1755_v62 = vpack.c.bf16 %v1731_v55, %v1730_v4  ;;  %v3307_v5 = vpop.permute.xlu0 %3306  ;;  %v3314_v54 = vunpack.i.h.bf16 %v3312_v33  ;;  %v3313_v11 = vunpack.i.l.bf16 %v3312_v33 }
 0x115   : > { %3601 = vrot.lane.b32.xlu1 %v3804_v15, %s3687_s29  ;;  %v3304_v15 = vunpack.i.h.bf16 %v3302_v42  ;;  %v3309_v13 = vunpack.i.h.bf16 %v3307_v5  ;;  %v3308_v57 = vunpack.i.l.bf16 %v3307_v5  ;;  %p3620_p12 = pnand %p3619_p11, %p3769_p5 }
 0x116   : > { %3596 = vrot.lane.b32.xlu0 %v4615_v24, %s3687_s29  ;;  %2871 = vmatmul.mubr.msk.bf16.gmra.mxu0 %vm1784_vm12, %v1755_v62  ;;  %v3294_v24 = vunpack.i.h.bf16 %v4674_v58  ;;  %v1501_v58 = vsel %vm1484_vm4, %v3996_v7, %v3293_v23  ;;  %v1536_v21 = vsel %vm1517_vm5, %v1503_v50, %v3313_v11  ;;  %s3689_s29 = smov [#allocation2]  }
 0x117   : > { %v3322_v1 = vpop.permute.xlu1 %3321  ;;  %v1504_v27 = vsel %vm1484_vm4, %v4017_v36, %v3304_v15  ;;  %v1534_v47 = vsel %vm1517_vm5, %v1501_v58, %v3308_v57  ;;  %p3621_p13 = pneg %p3620_p12 }
 0x118   : > { %v3317_v2 = vpop.permute.xlu0 %3316  ;;  %v3324_v28 = vunpack.i.h.bf16 %v3322_v1  ;;  %v3323_v31 = vunpack.i.l.bf16 %v3322_v1  ;;  %v1502_v46 = vsel %vm1484_vm4, %v3993_v6, %v3294_v24  ;;  %v1537_v20 = vsel %vm1517_vm5, %v1504_v27, %v3314_v54 }
 0x119   : > { %3611 = vrot.lane.b32.xlu1 %v3802_v14, %s3688_s8  ;;  %v3319_v56 = vunpack.i.h.bf16 %v3317_v2  ;;  %v3318_v18 = vunpack.i.l.bf16 %v3317_v2  ;;  %v1535_v59 = vsel %vm1517_vm5, %v1502_v46, %v3309_v13 }
 0x11a   : > { %3606 = vrot.lane.b32.xlu0 %v4621_v51, %s3688_s8  ;;  %v1569_v37 = vsel %vm1550_vm6, %v1536_v21, %v3323_v31  ;;  %v1570_v34 = vsel %vm1550_vm6, %v1537_v20, %v3324_v28  ;;  %s3622_s8 = sshll.u32 %s3689_s29, 4  ;;  %s3623_s8 = int_to_ptr.vmem [resolvable:$false] %s3622_s8 }
 0x11b   : > { %v4716_v12 = vpop.permute.xlu1 %3331  ;;  %v1567_v7 = vsel %vm1550_vm6, %v1534_v47, %v3318_v18  ;;  %v1568_v40 = vsel %vm1550_vm6, %v1535_v59, %v3319_v56  ;;  %s3624_s14 = scalar_lea.vmem %s3623_s8, 8192  ;;  %p3625_p0 = scmp.lt.s32.totalorder %s5101_s19, %s3623_s8 }
 0x11c   : > { %v3327_v32 = vpop.permute.xlu0 %3326  ;;  %v3334_v49 = vunpack.i.h.bf16 %v4716_v12  ;;  %v3333_v0 = vunpack.i.l.bf16 %v4716_v12  ;;  %p3626_p1 = scmp.lt.s32.totalorder %s3624_s14, %s3618_s23 }
 0x11d   : > { %v3329_v36 = vunpack.i.h.bf16 %v3327_v32  ;;  %v3328_v53 = vunpack.i.l.bf16 %v3327_v32 }
 0x11e   : > { %v1602_v24 = vsel %vm1583_vm7, %v1569_v37, %v3333_v0  ;;  %v1603_v23 = vsel %vm1583_vm7, %v1570_v34, %v3334_v49  ;;  %p3627_p2 = por %p3626_p1, %p3625_p0 }
 0x11f   : > { %v4718_v3 = vpop.permute.xlu1 %3341  ;;  %v1600_v44 = vsel %vm1583_vm7, %v1567_v7, %v3328_v53  ;;  %v1601_v22 = vsel %vm1583_vm7, %v1568_v40, %v3329_v36 }
 0x120   : > { %v3337_v45 = vpop.permute.xlu0 %3336  ;;  %v3344_v19 = vunpack.i.h.bf16 %v4718_v3  ;;  %v3343_v16 = vunpack.i.l.bf16 %v4718_v3  ;;  %p3628_p3 = pnand %p3627_p2, %p3621_p13 }
 0x121   : > { %v3339_v61 = vunpack.i.h.bf16 %v3337_v45  ;;  %v3338_v6 = vunpack.i.l.bf16 %v3337_v45 }
 0x122   : > { %v1635_v57 = vsel %vm1616_vm8, %v1602_v24, %v3343_v16 }
 0x123   : > { %v3352_v14 = vpop.permute.xlu1 %3351  ;;  %v1633_v55 = vsel %vm1616_vm8, %v1600_v44, %v3338_v6  ;;  %v1634_v4 = vsel %vm1616_vm8, %v1601_v22, %v3339_v61 }
 0x124   : > { %v3347_v51 = vpop.permute.xlu0 %3346  ;;  %v3354_v33 = vunpack.i.h.bf16 %v3352_v14  ;;  %v3353_v62 = vunpack.i.l.bf16 %v3352_v14  ;;  %v1636_v14 = vsel %vm1616_vm8, %v1603_v23, %v3344_v19 }
 0x125   : > { %v3349_v42 = vunpack.i.h.bf16 %v3347_v51  ;;  %v3348_v43 = vunpack.i.l.bf16 %v3347_v51 }
 0x126   : > { %v1668_v51 = vsel %vm1649_vm9, %v1635_v57, %v3353_v62  ;;  %v1669_v27 = vsel %vm1649_vm9, %v1636_v14, %v3354_v33 }
 0x127   : > { %v3362_v41 = vpop.permute.xlu1 %3361  ;;  %v1666_v1 = vsel %vm1649_vm9, %v1633_v55, %v3348_v43  ;;  %v1667_v2 = vsel %vm1649_vm9, %v1634_v4, %v3349_v42 }
 0x128   : > { %v3357_v48 = vpop.permute.xlu0 %3356  ;;  %v3364_v45 = vunpack.i.h.bf16 %v3362_v41  ;;  %v3363_v15 = vunpack.i.l.bf16 %v3362_v41 }
 0x129   : > { %v3359_v10 = vunpack.i.h.bf16 %v3357_v48  ;;  %v3358_v39 = vunpack.i.l.bf16 %v3357_v48 }
 0x12a   : > { %v1701_v18 = vsel %vm1682_vm10, %v1668_v51, %v3363_v15  ;;  %v1702_v46 = vsel %vm1682_vm10, %v1669_v27, %v3364_v45 }
 0x12b   : > { %v3372_v17 = vpop.permute.xlu1 %3371  ;;  %v1699_v25 = vsel %vm1682_vm10, %v1666_v1, %v3358_v39  ;;  %v1700_v3 = vsel %vm1682_vm10, %v1667_v2, %v3359_v10 }
 0x12c   : > { %v3367_v5 = vpop.permute.xlu0 %3366  ;;  %v3374_v7 = vunpack.i.h.bf16 %v3372_v17  ;;  %v3373_v40 = vunpack.i.l.bf16 %v3372_v17 }
 0x12d   : > { %v3369_v12 = vunpack.i.h.bf16 %v3367_v5  ;;  %v3368_v32 = vunpack.i.l.bf16 %v3367_v5 }
 0x12e   : > { %v1506_v33 = vsel %vm1484_vm4, %v4062_v9, %v3374_v7  ;;  %v1505_v17 = vsel %vm1484_vm4, %v4058_v8, %v3373_v40 }
 0x12f   : > { %v1732_v54 = vsel %vm1715_vm11, %v1699_v25, %v3368_v32  ;;  %v1733_v11 = vsel %vm1715_vm11, %v1700_v3, %v3369_v12  ;;  %v3382_v13 = vpop.permute.xlu1 %3381 }
 0x130   : > { %v1756_v28 = vpack.c.bf16 %v1733_v11, %v1732_v54  ;;  %v3377_v31 = vpop.permute.xlu0 %3376  ;;  %v3384_v6 = vunpack.i.h.bf16 %v3382_v13  ;;  %v3383_v48 = vunpack.i.l.bf16 %v3382_v13 }
 0x131   : > { %v3379_v50 = vunpack.i.h.bf16 %v3377_v31  ;;  %v3378_v56 = vunpack.i.l.bf16 %v3377_v31 }
 0x132   : > { %2874 = vmatprep.mubr.msk.bf16.mxu0 %vm1784_vm12, %v1756_v28  ;;  %v1508_v19 = vsel %vm1484_vm4, %v4081_v38, %v3384_v6  ;;  %v1507_v16 = vsel %vm1484_vm4, %v4084_v29, %v3383_v48 }
 0x133   : > { %v1735_v58 = vsel %vm1715_vm11, %v1702_v46, %v3379_v50  ;;  %v1734_v21 = vsel %vm1715_vm11, %v1701_v18, %v3378_v56  ;;  %v3392_v20 = vpop.permute.xlu1 %3391 }
 0x134   : > { %v1757_v59 = vpack.c.bf16 %v1735_v58, %v1734_v21  ;;  %v3387_v47 = vpop.permute.xlu0 %3386  ;;  %v3394_v42 = vunpack.i.h.bf16 %v3392_v20  ;;  %v3393_v43 = vunpack.i.l.bf16 %v3392_v20 }
 0x135   : > { %v3389_v49 = vunpack.i.h.bf16 %v3387_v47  ;;  %v3388_v0 = vunpack.i.l.bf16 %v3387_v47 }
 0x136   : > { %2875 = vmatmul.mubr.msk.bf16.gmra.mxu0 %vm1784_vm12, %v1757_v59  ;;  %v1540_v62 = vsel %vm1517_vm5, %v1507_v16, %v3393_v43  ;;  %v1541_v5 = vsel %vm1517_vm5, %v1508_v19, %v3394_v42 }
 0x137   : > { %v3402_v36 = vpop.permute.xlu1 %3401  ;;  %v1539_v1 = vsel %vm1517_vm5, %v1506_v33, %v3389_v49  ;;  %v1538_v2 = vsel %vm1517_vm5, %v1505_v17, %v3388_v0 }
 0x138   : > { %v3397_v53 = vpop.permute.xlu0 %3396  ;;  %v3404_v39 = vunpack.i.h.bf16 %v3402_v36  ;;  %v3403_v44 = vunpack.i.l.bf16 %v3402_v36 }
 0x139   : > { %v3399_v55 = vunpack.i.h.bf16 %v3397_v53  ;;  %v3398_v4 = vunpack.i.l.bf16 %v3397_v53 }
 0x13a   : > { %v1573_v29 = vsel %vm1550_vm6, %v1540_v62, %v3403_v44  ;;  %v1574_v45 = vsel %vm1550_vm6, %v1541_v5, %v3404_v39 }
 0x13b   : > { %v4764_v41 = vpop.permute.xlu1 %3411  ;;  %v1571_v8 = vsel %vm1550_vm6, %v1538_v2, %v3398_v4  ;;  %v1572_v3 = vsel %vm1550_vm6, %v1539_v1, %v3399_v55 }
 0x13c   : > { %v3407_v37 = vpop.permute.xlu0 %3406  ;;  %v3414_v54 = vunpack.i.h.bf16 %v4764_v41  ;;  %v3413_v11 = vunpack.i.l.bf16 %v4764_v41 }
 0x13d   : > { %v3409_v38 = vunpack.i.h.bf16 %v3407_v37  ;;  %v3408_v12 = vunpack.i.l.bf16 %v3407_v37 }
 0x13f   : > { %v4766_v34 = vpop.permute.xlu1 %3421  ;;  %v1604_v14 = vsel %vm1583_vm7, %v1571_v8, %v3408_v12  ;;  %v1605_v28 = vsel %vm1583_vm7, %v1572_v3, %v3409_v38 }
 0x140   : > { %v3417_v61 = vpop.permute.xlu0 %3416  ;;  %v3424_v31 = vunpack.i.h.bf16 %v4766_v34  ;;  %v3423_v51 = vunpack.i.l.bf16 %v4766_v34  ;;  %v1606_v34 = vsel %vm1583_vm7, %v1573_v29, %v3413_v11 }
 0x141   : > { %v3419_v15 = vunpack.i.h.bf16 %v3417_v61  ;;  %v3418_v9 = vunpack.i.l.bf16 %v3417_v61  ;;  %v1607_v61 = vsel %vm1583_vm7, %v1574_v45, %v3414_v54 }
 0x142   : > { %v1639_v40 = vsel %vm1616_vm8, %v1606_v34, %v3423_v51  ;;  %v1640_v42 = vsel %vm1616_vm8, %v1607_v61, %v3424_v31  ;;  %v5163_v31 = vld [vmem:[#allocation5_spill] sm:$0xff] }
 0x143   : > { %v3432_v10 = vpop.permute.xlu1 %3431  ;;  %v1637_v50 = vsel %vm1616_vm8, %v1604_v14, %v3418_v9  ;;  %v1638_v56 = vsel %vm1616_vm8, %v1605_v28, %v3419_v15 }
 0x144   : > { %v3427_v22 = vpop.permute.xlu0 %3426  ;;  %v3434_v18 = vunpack.i.h.bf16 %v3432_v10  ;;  %v3433_v46 = vunpack.i.l.bf16 %v3432_v10 }
 0x145   : > { %v3429_v24 = vunpack.i.h.bf16 %v3427_v22  ;;  %v3428_v23 = vunpack.i.l.bf16 %v3427_v22 }
 0x146   : > { %v1672_v0 = vsel %vm1649_vm9, %v1639_v40, %v3433_v46  ;;  %v1673_v10 = vsel %vm1649_vm9, %v1640_v42, %v3434_v18 }
 0x147   : > { %v3442_v32 = vpop.permute.xlu1 %3441  ;;  %v1670_v21 = vsel %vm1649_vm9, %v1637_v50, %v3428_v23  ;;  %v1671_v20 = vsel %vm1649_vm9, %v1638_v56, %v3429_v24 }
 0x148   : > { %v3437_v25 = vpop.permute.xlu0 %3436  ;;  %v3444_v36 = vunpack.i.h.bf16 %v3442_v32  ;;  %v3443_v53 = vunpack.i.l.bf16 %v3442_v32 }
 0x149   : > { %v3439_v13 = vunpack.i.h.bf16 %v3437_v25  ;;  %v3438_v57 = vunpack.i.l.bf16 %v3437_v25 }
 0x14a   : > { %v1705_v22 = vsel %vm1682_vm10, %v1672_v0, %v3443_v53  ;;  %v1706_v19 = vsel %vm1682_vm10, %v1673_v10, %v3444_v36 }
 0x14b   : > { %v3452_v27 = vpop.permute.xlu1 %3451  ;;  %v1703_v41 = vsel %vm1682_vm10, %v1670_v21, %v3438_v57  ;;  %v1704_v37 = vsel %vm1682_vm10, %v1671_v20, %v3439_v13 }
 0x14c   : > { %v3447_v58 = vpop.permute.xlu0 %3446  ;;  %v3454_v45 = vunpack.i.h.bf16 %v3452_v27  ;;  %v3453_v15 = vunpack.i.l.bf16 %v3452_v27  ;;  %v5164_v27 = vld [vmem:[#allocation6_spill] sm:$0xff] }
 0x14d   : > { %v3449_v59 = vunpack.i.h.bf16 %v3447_v58  ;;  %v3448_v47 = vunpack.i.l.bf16 %v3447_v58 }
 0x14e   : > { %v1510_v51 = vsel %vm1484_vm4, %v5163_v31, %v3454_v45  ;;  %v1509_v50 = vsel %vm1484_vm4, %v5164_v27, %v3453_v15  ;;  %v4858_v27 = vld [vmem:[%s5149_s2] ss:$0 sm:$0xff] }
 0x14f   : > { %v1736_v6 = vsel %vm1715_vm11, %v1703_v41, %v3448_v47  ;;  %v1737_v48 = vsel %vm1715_vm11, %v1704_v37, %v3449_v59  ;;  %v3462_v7 = vpop.permute.xlu1 %3461 }
 0x150   : > { %v1758_v43 = vpack.c.bf16 %v1737_v48, %v1736_v6  ;;  %v3457_v49 = vpop.permute.xlu0 %3456  ;;  %v3464_v32 = vunpack.i.h.bf16 %v3462_v7  ;;  %v3463_v29 = vunpack.i.l.bf16 %v3462_v7 }
 0x151   : > { %v3459_v39 = vunpack.i.h.bf16 %v3457_v49  ;;  %v3458_v44 = vunpack.i.l.bf16 %v3457_v49 }
 0x152   : > { %2878 = vmatprep.mubr.msk.bf16.mxu0 %vm1784_vm12, %v1758_v43  ;;  %v1512_v13 = vsel %vm1484_vm4, %v4252_v52, %v3464_v32  ;;  %v1511_v57 = vsel %vm1484_vm4, %v4255_v30, %v3463_v29 }
 0x153   : > { %v1739_v16 = vsel %vm1715_vm11, %v1706_v19, %v3459_v39  ;;  %v1738_v55 = vsel %vm1715_vm11, %v1705_v22, %v3458_v44  ;;  %v3472_v4 = vpop.permute.xlu1 %3471 }
 0x154   : > { %v1759_v33 = vpack.c.bf16 %v1739_v16, %v1738_v55  ;;  %v3467_v17 = vpop.permute.xlu0 %3466  ;;  %v3474_v9 = vunpack.i.h.bf16 %v3472_v4  ;;  %v3473_v25 = vunpack.i.l.bf16 %v3472_v4 }
 0x155   : > { %v3469_v8 = vunpack.i.h.bf16 %v3467_v17  ;;  %v3468_v3 = vunpack.i.l.bf16 %v3467_v17 }
 0x156   : > { %2879 = vmatmul.mubr.msk.bf16.gmra.mxu0 %vm1784_vm12, %v1759_v33  ;;  %v1544_v56 = vsel %vm1517_vm5, %v1511_v57, %v3473_v25  ;;  %v1545_v18 = vsel %vm1517_vm5, %v1512_v13, %v3474_v9 }
 0x157   : > { %v3482_v62 = vpop.permute.xlu1 %3481  ;;  %v1543_v46 = vsel %vm1517_vm5, %v1510_v51, %v3469_v8  ;;  %v1542_v58 = vsel %vm1517_vm5, %v1509_v50, %v3468_v3 }
 0x158   : > { %v3477_v5 = vpop.permute.xlu0 %3476  ;;  %v3484_v23 = vunpack.i.h.bf16 %v3482_v62  ;;  %v3483_v54 = vunpack.i.l.bf16 %v3482_v62 }
 0x159   : > { %v3479_v14 = vunpack.i.h.bf16 %v3477_v5  ;;  %v3478_v28 = vunpack.i.l.bf16 %v3477_v5 }
 0x15a   : > { %v1577_v30 = vsel %vm1550_vm6, %v1544_v56, %v3483_v54  ;;  %v1578_v59 = vsel %vm1550_vm6, %v1545_v18, %v3484_v23 }
 0x15b   : > { %v4810_v1 = vpop.permute.xlu1 %3491  ;;  %v1575_v41 = vsel %vm1550_vm6, %v1542_v58, %v3478_v28  ;;  %v1576_v37 = vsel %vm1550_vm6, %v1543_v46, %v3479_v14 }
 0x15c   : > { %v3487_v2 = vpop.permute.xlu0 %3486  ;;  %v3494_v6 = vunpack.i.h.bf16 %v4810_v1  ;;  %v3493_v48 = vunpack.i.l.bf16 %v4810_v1 }
 0x15d   : > { %v3489_v52 = vunpack.i.h.bf16 %v3487_v2  ;;  %v3488_v21 = vunpack.i.l.bf16 %v3487_v2 }
 0x15f   : > { %v4812_v38 = vpop.permute.xlu1 %3501  ;;  %v1608_v42 = vsel %vm1583_vm7, %v1575_v41, %v3488_v21  ;;  %v1609_v43 = vsel %vm1583_vm7, %v1576_v37, %v3489_v52 }
 0x160   : > { %v3497_v12 = vpop.permute.xlu0 %3496  ;;  %v3504_v49 = vunpack.i.h.bf16 %v4812_v38  ;;  %v3503_v0 = vunpack.i.l.bf16 %v4812_v38  ;;  %v1610_v38 = vsel %vm1583_vm7, %v1577_v30, %v3493_v48 }
 0x161   : > { %v3499_v47 = vunpack.i.h.bf16 %v3497_v12  ;;  %v3498_v36 = vunpack.i.l.bf16 %v3497_v12  ;;  %v1611_v12 = vsel %vm1583_vm7, %v1578_v59, %v3494_v6  ;;  %v4865_v59 = vld [vmem:[%s5150_s3] ss:$0 sm:$0xff] }
 0x162   : > { %v1643_v15 = vsel %vm1616_vm8, %v1610_v38, %v3503_v0  ;;  %v1644_v9 = vsel %vm1616_vm8, %v1611_v12, %v3504_v49 }
 0x163   : > { %v3512_v24 = vpop.permute.xlu1 %3511  ;;  %v1641_v39 = vsel %vm1616_vm8, %v1608_v42, %v3498_v36  ;;  %v1642_v44 = vsel %vm1616_vm8, %v1609_v43, %v3499_v47 }
 0x164   : > { %v3507_v11 = vpop.permute.xlu0 %3506  ;;  %v3514_v22 = vunpack.i.h.bf16 %v3512_v24  ;;  %v3513_v19 = vunpack.i.l.bf16 %v3512_v24 }
 0x165   : > { %v3509_v34 = vunpack.i.h.bf16 %v3507_v11  ;;  %v3508_v61 = vunpack.i.l.bf16 %v3507_v11 }
 0x166   : > { %v1676_v3 = vsel %vm1649_vm9, %v1643_v15, %v3513_v19  ;;  %v1677_v24 = vsel %vm1649_vm9, %v1644_v9, %v3514_v22 }
 0x167   : > { %v3522_v20 = vpop.permute.xlu1 %3521  ;;  %v1674_v55 = vsel %vm1649_vm9, %v1641_v39, %v3508_v61  ;;  %v1675_v4 = vsel %vm1649_vm9, %v1642_v44, %v3509_v34 }
 0x168   : > { %v3517_v53 = vpop.permute.xlu0 %3516  ;;  %v3524_v62 = vunpack.i.h.bf16 %v3522_v20  ;;  %v3523_v5 = vunpack.i.l.bf16 %v3522_v20 }
 0x169   : > { %v3519_v7 = vunpack.i.h.bf16 %v3517_v53  ;;  %v3518_v40 = vunpack.i.l.bf16 %v3517_v53 }
 0x16a   : > { %v1709_v11 = vsel %vm1682_vm10, %v1676_v3, %v3523_v5  ;;  %v1710_v13 = vsel %vm1682_vm10, %v1677_v24, %v3524_v62 }
 0x16b   : > { %v3532_v10 = vpop.permute.xlu1 %3531  ;;  %v1707_v1 = vsel %vm1682_vm10, %v1674_v55, %v3518_v40  ;;  %v1708_v2 = vsel %vm1682_vm10, %v1675_v4, %v3519_v7 }
 0x16c   : > { %v3527_v16 = vpop.permute.xlu0 %3526  ;;  %v3534_v18 = vunpack.i.h.bf16 %v3532_v10  ;;  %v3533_v21 = vunpack.i.l.bf16 %v3532_v10 }
 0x16d   : > { %v3529_v33 = vunpack.i.h.bf16 %v3527_v16  ;;  %v3528_v17 = vunpack.i.l.bf16 %v3527_v16 }
 0x16e   : > { %v1514_v34 = vsel %vm1484_vm4, %v4409_v26, %v3534_v18  ;;  %v1513_v42 = vsel %vm1484_vm4, %v4413_v63, %v3533_v21 }
 0x16f   : > { %v1740_v32 = vsel %vm1715_vm11, %v1707_v1, %v3528_v17  ;;  %v1741_v29 = vsel %vm1715_vm11, %v1708_v2, %v3529_v33  ;;  %v3542_v45 = vpop.permute.xlu1 %3541 }
 0x170   : > { %v1760_v25 = vpack.c.bf16 %v1741_v29, %v1740_v32  ;;  %v3537_v8 = vpop.permute.xlu0 %3536  ;;  %v3544_v20 = vunpack.i.h.bf16 %v3542_v45  ;;  %v3543_v30 = vunpack.i.l.bf16 %v3542_v45 }
 0x171   : > { %v3539_v23 = vunpack.i.h.bf16 %v3537_v8  ;;  %v3538_v54 = vunpack.i.l.bf16 %v3537_v8 }
 0x172   : > { %2882 = vmatprep.mubr.msk.bf16.mxu0 %vm1784_vm12, %v1760_v25  ;;  %v1516_v43 = vsel %vm1484_vm4, %v4433_v35, %v3544_v20  ;;  %v1515_v49 = vsel %vm1484_vm4, %v4436_v60, %v3543_v30 }
 0x173   : > { %v1743_v57 = vsel %vm1715_vm11, %v1710_v13, %v3539_v23  ;;  %v1742_v14 = vsel %vm1715_vm11, %v1709_v11, %v3538_v54  ;;  %v3552_v28 = vpop.permute.xlu1 %3551 }
 0x174   : > { %v1761_v31 = vpack.c.bf16 %v1743_v57, %v1742_v14  ;;  %v3547_v51 = vpop.permute.xlu0 %3546  ;;  %v3553_v36 = vunpack.i.l.bf16 %v3552_v28  ;;  %v3554_v41 = vunpack.i.h.bf16 %v3552_v28 }
 0x175   : > { %v3549_v10 = vunpack.i.h.bf16 %v3547_v51  ;;  %v3548_v39 = vunpack.i.l.bf16 %v3547_v51 }
 0x176   : > { %v2860_v50 = vpop.f32.mrf.mxu0  ;;  %2883 = vmatmul.mubr.msk.bf16.gmra.mxu0 %vm1784_vm12, %v1761_v31  ;;  %v1548_v26 = vsel %vm1517_vm5, %v1515_v49, %v3553_v36  ;;  %v1549_v22 = vsel %vm1517_vm5, %v1516_v43, %v3554_v41 }
 0x177   : > { %v3562_v56 = vpop.permute.xlu1 %3561  ;;  %v2007_v46 = vmul.f32 %v2860_v50, %v4858_v27  ;;  %v1547_v62 = vsel %vm1517_vm5, %v1514_v34, %v3549_v10  ;;  %v1546_v38 = vsel %vm1517_vm5, %v1513_v42, %v3548_v39 }
 0x178   : > { %v3557_v58 = vpop.permute.xlu0 %3556  ;;  %v1871_v52 = vpop.f32.mrf.mxu0  ;;  %v3563_v19 = vunpack.i.l.bf16 %v3562_v56  ;;  %v3564_v60 = vunpack.i.h.bf16 %v3562_v56 }
 0x179   : > { %v2005_v47 = vmul.f32 %v4858_v27, %v1871_v52  ;;  %v2046_v61 = vadd.f32 %v4865_v59, %v2007_v46  ;;  %v3559_v5 = vunpack.i.h.bf16 %v3557_v58  ;;  %v3558_v1 = vunpack.i.l.bf16 %v3557_v58 }
 0x17a   : > { %v2861_v53 = vpop.f32.mrf.mxu0  ;;  %v1581_v12 = vsel %vm1550_vm6, %v1548_v26, %v3563_v19  ;;  %v1582_v24 = vsel %vm1550_vm6, %v1549_v22, %v3564_v60 }
 0x17b   : > { %v3572_v37 = vpop.permute.xlu1 %3571  ;;  %v2044_v6 = vadd.f32 %v4865_v59, %v2005_v47  ;;  %v2008_v48 = vmul.f32 %v2861_v53, %v4858_v27  ;;  %v2110_v4 = vmul.f32 0.1, %v2046_v61  ;;  %vm2078_vm0 = vcmp.gt.f32.partialorder %v2046_v61, 0.0 }
 0x17c   : > { %v3567_v7 = vpop.permute.xlu0 %3566  ;;  %v1874_v40 = vpop.f32.mrf.mxu0  ;;  %v3574_v9 = vunpack.i.h.bf16 %v3572_v37  ;;  %v3573_v25 = vunpack.i.l.bf16 %v3572_v37  ;;  %v1579_v13 = vsel %vm1550_vm6, %v1546_v38, %v3558_v1  ;;  %v1580_v57 = vsel %vm1550_vm6, %v1547_v62, %v3559_v5 }
 0x17d   : > { %v2006_v0 = vmul.f32 %v4858_v27, %v1874_v40  ;;  %v2047_v44 = vadd.f32 %v4865_v59, %v2008_v48  ;;  %v2108_v55 = vmul.f32 0.1, %v2044_v6  ;;  %vm2076_vm15 = vcmp.gt.f32.partialorder %v2044_v6, 0.0 }
 0x17e   : > { %v2142_v15 = vsel %vm2078_vm0, %v2046_v61, %v2110_v4  ;;  %v3569_v23 = vunpack.i.h.bf16 %v3567_v7  ;;  %v3568_v54 = vunpack.i.l.bf16 %v3567_v7  ;;  %v1614_v46 = vsel %vm1583_vm7, %v1581_v12, %v3573_v25 }
 0x17f   : > { %v2045_v16 = vadd.f32 %v4865_v59, %v2006_v0  ;;  %v3582_v63 = vpop.permute.xlu1 %3581  ;;  %vm2079_vm14 = vcmp.gt.f32.partialorder %v2047_v44, 0.0  ;;  %v2111_v35 = vmul.f32 0.1, %v2047_v44  ;;  %v2140_v29 = vsel %vm2076_vm15, %v2044_v6, %v2108_v55 }
 0x180   : > { %v3577_v33 = vpop.permute.xlu0 %3576  ;;  %v3584_v14 = vunpack.i.h.bf16 %v3582_v63  ;;  %v3583_v28 = vunpack.i.l.bf16 %v3582_v63  ;;  %v1615_v58 = vsel %vm1583_vm7, %v1582_v24, %v3574_v9  ;;  %v1612_v30 = vsel %vm1583_vm7, %v1579_v13, %v3568_v54 }
 0x181   : > { %vm2077_vm1 = vcmp.gt.f32.partialorder %v2045_v16, 0.0  ;;  %v2109_v17 = vmul.f32 0.1, %v2045_v16  ;;  %v2143_v2 = vsel %vm2079_vm14, %v2047_v44, %v2111_v35  ;;  %v3579_v31 = vunpack.i.h.bf16 %v3577_v33 }
 0x182   : > { %v2173_v11 = vpack.c.bf16 %v2143_v2, %v2142_v15  ;;  %v3578_v51 = vunpack.i.l.bf16 %v3577_v33  ;;  %v1613_v47 = vsel %vm1583_vm7, %v1580_v57, %v3569_v23  ;;  %v1647_v41 = vsel %vm1616_vm8, %v1614_v46, %v3583_v28 }
 0x183   : > { %v3592_v32 = vpop.permute.xlu1 %3591  ;;  %v2141_v45 = vsel %vm2077_vm1, %v2045_v16, %v2109_v17  ;;  %v1648_v37 = vsel %vm1616_vm8, %v1615_v58, %v3584_v14  ;;  %v1646_v48 = vsel %vm1616_vm8, %v1613_v47, %v3579_v31 }
 0x184   : > { %v3587_v8 = vpop.permute.xlu0 %3586  ;;  %v2172_v3 = vpack.c.bf16 %v2141_v45, %v2140_v29  ;;  %v3594_v50 = vunpack.i.h.bf16 %v3592_v32  ;;  %v3593_v56 = vunpack.i.l.bf16 %v3592_v32  ;;  %v1645_v6 = vsel %vm1616_vm8, %v1612_v30, %v3578_v51 }
 0x185   : > { %v3589_v52 = vunpack.i.h.bf16 %v3587_v8  ;;  %v3588_v21 = vunpack.i.l.bf16 %v3587_v8 }
 0x186   : > { %2892 = vmatprep.mubr.msk.bf16.mxu1 %vm1517_vm5, %v2172_v3  ;;  %v1680_v7 = vsel %vm1649_vm9, %v1647_v41, %v3593_v56  ;;  %v1681_v40 = vsel %vm1649_vm9, %v1648_v37, %v3594_v50 }
 0x187   : > { %2893 = vmatmul.mubr.msk.bf16.vlgmr.msra.gmra.mxu1 %vm1517_vm5, %v2173_v11  ;;  %v3602_v18 = vpop.permute.xlu1 %3601  ;;  %v1678_v43 = vsel %vm1649_vm9, %v1645_v6, %v3588_v21  ;;  %v1679_v49 = vsel %vm1649_vm9, %v1646_v48, %v3589_v52 }
 0x188   : > { %v3597_v20 = vpop.permute.xlu0 %3596  ;;  %v3604_v36 = vunpack.i.h.bf16 %v3602_v18  ;;  %v3603_v53 = vunpack.i.l.bf16 %v3602_v18 }
 0x189   : > { %v3599_v34 = vunpack.i.h.bf16 %v3597_v20  ;;  %v3598_v61 = vunpack.i.l.bf16 %v3597_v20 }
 0x18a   : > { %v1713_v39 = vsel %vm1682_vm10, %v1680_v7, %v3603_v53  ;;  %v1714_v44 = vsel %vm1682_vm10, %v1681_v40, %v3604_v36 }
 0x18b   : > { %v3612_v42 = vpop.permute.xlu1 %3611  ;;  %v1711_v16 = vsel %vm1682_vm10, %v1678_v43, %v3598_v61  ;;  %v1712_v63 = vsel %vm1682_vm10, %v1679_v49, %v3599_v34 }
 0x18c   : > { %v3614_v0 = vunpack.i.h.bf16 %v3612_v42  ;;  %v3613_v26 = vunpack.i.l.bf16 %v3612_v42  ;;  %v3607_v10 = vpop.permute.xlu0 %3606 }
 0x18d   : > { %v3609_v22 = vunpack.i.h.bf16 %v3607_v10  ;;  %v3608_v19 = vunpack.i.l.bf16 %v3607_v10 }
 0x18e   : > { %v1746_v55 = vsel %vm1715_vm11, %v1713_v39, %v3613_v26  ;;  %v1747_v4 = vsel %vm1715_vm11, %v1714_v44, %v3614_v0 }
 0x18f   : > { %v1763_v35 = vpack.c.bf16 %v1747_v4, %v1746_v55  ;;  %v1744_v33 = vsel %vm1715_vm11, %v1711_v16, %v3608_v19  ;;  %v1745_v60 = vsel %vm1715_vm11, %v1712_v63, %v3609_v22 }
 0x190   : > { %v1762_v17 = vpack.c.bf16 %v1745_v60, %v1744_v33 }
 0x192   : > { %2886 = vmatprep.mubr.msk.bf16.mxu0 %vm1784_vm12, %v1762_v17 }
 0x193   : > { %2887 = vmatmul.mubr.msk.bf16.gmra.mxu0 %vm1784_vm12, %v1763_v35 }
 0x196   : > { %v2864_v62 = vpop.f32.mrf.mxu0 }
 0x197   : > { %v2011_v1 = vmul.f32 %v2864_v62, %v4858_v27 }
 0x198   : > { %v1887_v5 = vpop.f32.mrf.mxu0 }
 0x199   : > { %v2009_v2 = vmul.f32 %v4858_v27, %v1887_v5  ;;  %v2050_v45 = vadd.f32 %v4865_v59, %v2011_v1 }
 0x19a   : > { %v2865_v38 = vpop.f32.mrf.mxu0 }
 0x19b   : > { %v2012_v12 = vmul.f32 %v2865_v38, %v4858_v27  ;;  %v2048_v32 = vadd.f32 %v4865_v59, %v2009_v2  ;;  %v2114_v24 = vmul.f32 0.1, %v2050_v45  ;;  %vm2082_vm4 = vcmp.gt.f32.partialorder %v2050_v45, 0.0 }
 0x19c   : > { %v1890_v29 = vpop.f32.mrf.mxu0 }
 0x19d   : > { %v2051_v15 = vadd.f32 %v4865_v59, %v2012_v12  ;;  %v2010_v9 = vmul.f32 %v4858_v27, %v1890_v29  ;;  %v2112_v8 = vmul.f32 0.1, %v2048_v32  ;;  %vm2080_vm3 = vcmp.gt.f32.partialorder %v2048_v32, 0.0 }
 0x19e   : > { %v2146_v57 = vsel %vm2082_vm4, %v2050_v45, %v2114_v24 }
 0x19f   : > { %v2115_v25 = vmul.f32 0.1, %v2051_v15  ;;  %vm2083_vm2 = vcmp.gt.f32.partialorder %v2051_v15, 0.0  ;;  %v2049_v3 = vadd.f32 %v4865_v59, %v2010_v9  ;;  %v2144_v11 = vsel %vm2080_vm3, %v2048_v32, %v2112_v8 }
 0x1a1   : > { %vm2081_vm6 = vcmp.gt.f32.partialorder %v2049_v3, 0.0  ;;  %v2113_v23 = vmul.f32 0.1, %v2049_v3  ;;  %v2147_v54 = vsel %vm2083_vm2, %v2051_v15, %v2115_v25 }
 0x1a2   : > { %v2175_v28 = vpack.c.bf16 %v2147_v54, %v2146_v57 }
 0x1a3   : > { %v2145_v13 = vsel %vm2081_vm6, %v2049_v3, %v2113_v23 }
 0x1a4   : > { %v2174_v14 = vpack.c.bf16 %v2145_v13, %v2144_v11 }
 0x1a6   : > { %2896 = vmatprep.mubr.msk.bf16.mxu1 %vm1517_vm5, %v2174_v14 }
 0x1a7   : > { %2897 = vmatmul.mubr.msk.bf16.gmra.mxu1 %vm1517_vm5, %v2175_v28 }
 0x1b6   : > { %v2868_v31 = vpop.f32.mrf.mxu0 }
 0x1b7   : > { %v2015_v50 = vmul.f32 %v2868_v31, %v4858_v27 }
 0x1b8   : > { %v1903_v51 = vpop.f32.mrf.mxu0 }
 0x1b9   : > { %v2013_v56 = vmul.f32 %v4858_v27, %v1903_v51  ;;  %v2054_v21 = vadd.f32 %v4865_v59, %v2015_v50 }
 0x1ba   : > { %v2869_v18 = vpop.f32.mrf.mxu0 }
 0x1bb   : > { %v2016_v46 = vmul.f32 %v2869_v18, %v4858_v27  ;;  %v2052_v58 = vadd.f32 %v4865_v59, %v2013_v56  ;;  %v2118_v41 = vmul.f32 0.1, %v2054_v21  ;;  %vm2086_vm9 = vcmp.gt.f32.partialorder %v2054_v21, 0.0 }
 0x1bc   : > { %v1906_v52 = vpop.f32.mrf.mxu0 }
 0x1bd   : > { %v2055_v20 = vadd.f32 %v4865_v59, %v2016_v46  ;;  %v2014_v30 = vmul.f32 %v4858_v27, %v1906_v52  ;;  %v2116_v36 = vmul.f32 0.1, %v2052_v58  ;;  %vm2084_vm8 = vcmp.gt.f32.partialorder %v2052_v58, 0.0 }
 0x1be   : > { %v2150_v48 = vsel %vm2086_vm9, %v2054_v21, %v2118_v41 }
 0x1bf   : > { %v2119_v47 = vmul.f32 0.1, %v2055_v20  ;;  %vm2087_vm7 = vcmp.gt.f32.partialorder %v2055_v20, 0.0  ;;  %v2053_v53 = vadd.f32 %v4865_v59, %v2014_v30  ;;  %v2148_v61 = vsel %vm2084_vm8, %v2052_v58, %v2116_v36 }
 0x1c1   : > { %vm2085_vm10 = vcmp.gt.f32.partialorder %v2053_v53, 0.0  ;;  %v2117_v37 = vmul.f32 0.1, %v2053_v53  ;;  %v2151_v34 = vsel %vm2087_vm7, %v2055_v20, %v2119_v47 }
 0x1c2   : > { %v2177_v40 = vpack.c.bf16 %v2151_v34, %v2150_v48 }
 0x1c3   : > { %v2149_v6 = vsel %vm2085_vm10, %v2053_v53, %v2117_v37 }
 0x1c4   : > { %v2176_v7 = vpack.c.bf16 %v2149_v6, %v2148_v61 }
 0x1c6   : > { %2900 = vmatprep.mubr.msk.bf16.mxu1 %vm1517_vm5, %v2176_v7 }
 0x1c7   : > { %2901 = vmatmul.mubr.msk.bf16.gmra.mxu1 %vm1517_vm5, %v2177_v40 }
 0x1d6   : > { %v2872_v42 = vpop.f32.mrf.mxu0 }
 0x1d7   : > { %v2019_v49 = vmul.f32 %v2872_v42, %v4858_v27 }
 0x1d8   : > { %v1919_v43 = vpop.f32.mrf.mxu0 }
 0x1d9   : > { %v2017_v0 = vmul.f32 %v4858_v27, %v1919_v43  ;;  %v2058_v22 = vadd.f32 %v4865_v59, %v2019_v49 }
 0x1da   : > { %v2873_v26 = vpop.f32.mrf.mxu0 }
 0x1db   : > { %v2020_v10 = vmul.f32 %v2873_v26, %v4858_v27  ;;  %v2056_v39 = vadd.f32 %v4865_v59, %v2017_v0  ;;  %v2122_v35 = vmul.f32 0.1, %v2058_v22  ;;  %vm2090_vm13 = vcmp.gt.f32.partialorder %v2058_v22, 0.0 }
 0x1dc   : > { %v1922_v44 = vpop.f32.mrf.mxu0 }
 0x1dd   : > { %v2059_v19 = vadd.f32 %v4865_v59, %v2020_v10  ;;  %v2018_v16 = vmul.f32 %v4858_v27, %v1922_v44  ;;  %v2120_v55 = vmul.f32 0.1, %v2056_v39  ;;  %vm2088_vm12 = vcmp.gt.f32.partialorder %v2056_v39, 0.0 }
 0x1de   : > { %v2154_v5 = vsel %vm2090_vm13, %v2058_v22, %v2122_v35 }
 0x1df   : > { %v2123_v63 = vmul.f32 0.1, %v2059_v19  ;;  %vm2091_vm11 = vcmp.gt.f32.partialorder %v2059_v19, 0.0  ;;  %v2057_v4 = vadd.f32 %v4865_v59, %v2018_v16  ;;  %v2152_v17 = vsel %vm2088_vm12, %v2056_v39, %v2120_v55 }
 0x1e1   : > { %vm2089_vm14 = vcmp.gt.f32.partialorder %v2057_v4, 0.0  ;;  %v2121_v33 = vmul.f32 0.1, %v2057_v4  ;;  %v2155_v60 = vsel %vm2091_vm11, %v2059_v19, %v2123_v63 }
 0x1e2   : > { %v2179_v2 = vpack.c.bf16 %v2155_v60, %v2154_v5 }
 0x1e3   : > { %v2153_v62 = vsel %vm2089_vm14, %v2057_v4, %v2121_v33 }
 0x1e4   : > { %v2178_v1 = vpack.c.bf16 %v2153_v62, %v2152_v17 }
 0x1e6   : > { %2904 = vmatprep.mubr.msk.bf16.mxu1 %vm1517_vm5, %v2178_v1 }
 0x1e7   : > { %2905 = vmatmul.mubr.msk.bf16.gmra.mxu1 %vm1517_vm5, %v2179_v2 }
 0x1f6   : > { %v2876_v38 = vpop.f32.mrf.mxu0 }
 0x1f7   : > { %v2023_v32 = vmul.f32 %v2876_v38, %v4858_v27 }
 0x1f8   : > { %v1935_v12 = vpop.f32.mrf.mxu0 }
 0x1f9   : > { %v2021_v29 = vmul.f32 %v4858_v27, %v1935_v12  ;;  %v2062_v8 = vadd.f32 %v4865_v59, %v2023_v32 }
 0x1fa   : > { %v2877_v45 = vpop.f32.mrf.mxu0 }
 0x1fb   : > { %v2024_v15 = vmul.f32 %v2877_v45, %v4858_v27  ;;  %v2060_v9 = vadd.f32 %v4865_v59, %v2021_v29  ;;  %v2126_v13 = vmul.f32 0.1, %v2062_v8  ;;  %vm2094_vm1 = vcmp.gt.f32.partialorder %v2062_v8, 0.0  ;;  %v4975_v29 = vld [vmem:[%s5152_s5] ss:$0 sm:$0xff] }
 0x1fc   : > { %v1938_v25 = vpop.f32.mrf.mxu0 }
 0x1fd   : > { %v2063_v3 = vadd.f32 %v4865_v59, %v2024_v15  ;;  %v2022_v24 = vmul.f32 %v4858_v27, %v1938_v25  ;;  %v2124_v54 = vmul.f32 0.1, %v2060_v9  ;;  %vm2092_vm0 = vcmp.gt.f32.partialorder %v2060_v9, 0.0 }
 0x1fe   : > { %v2158_v51 = vsel %vm2094_vm1, %v2062_v8, %v2126_v13 }
 0x1ff   : > { %v2127_v23 = vmul.f32 0.1, %v2063_v3  ;;  %vm2095_vm15 = vcmp.gt.f32.partialorder %v2063_v3, 0.0  ;;  %v2061_v11 = vadd.f32 %v4865_v59, %v2022_v24  ;;  %v2156_v28 = vsel %vm2092_vm0, %v2060_v9, %v2124_v54  ;;  %v4982_v9 = vld [vmem:[%s5153_s6] ss:$0 sm:$0xff] }
 0x201   : > { %vm2093_vm2 = vcmp.gt.f32.partialorder %v2061_v11, 0.0  ;;  %v2125_v57 = vmul.f32 0.1, %v2061_v11  ;;  %v2159_v14 = vsel %vm2095_vm15, %v2063_v3, %v2127_v23 }
 0x202   : > { %v2181_v56 = vpack.c.bf16 %v2159_v14, %v2158_v51 }
 0x203   : > { %v2157_v31 = vsel %vm2093_vm2, %v2061_v11, %v2125_v57 }
 0x204   : > { %v2180_v50 = vpack.c.bf16 %v2157_v31, %v2156_v28 }
 0x206   : > { %2908 = vmatprep.mubr.msk.bf16.mxu1 %vm1517_vm5, %v2180_v50 }
 0x207   : > { %2909 = vmatmul.mubr.msk.bf16.gmra.mxu1 %vm1517_vm5, %v2181_v56 }
 0x216   : > { %v2880_v18 = vpop.f32.mrf.mxu0 }
 0x217   : > { %v2027_v58 = vmul.f32 %v2880_v18, %v4858_v27 }
 0x218   : > { %v1951_v46 = vpop.f32.mrf.mxu0 }
 0x219   : > { %v2025_v52 = vmul.f32 %v4858_v27, %v1951_v46  ;;  %v2066_v36 = vadd.f32 %v4865_v59, %v2027_v58 }
 0x21a   : > { %v2881_v21 = vpop.f32.mrf.mxu0 }
 0x21b   : > { %v2028_v20 = vmul.f32 %v2881_v21, %v4858_v27  ;;  %v2064_v30 = vadd.f32 %v4865_v59, %v2025_v52  ;;  %v2130_v6 = vmul.f32 0.1, %v2066_v36  ;;  %vm2098_vm6 = vcmp.gt.f32.partialorder %v2066_v36, 0.0 }
 0x21c   : > { %v1954_v47 = vpop.f32.mrf.mxu0 }
 0x21d   : > { %v2067_v53 = vadd.f32 %v4865_v59, %v2028_v20  ;;  %v2026_v41 = vmul.f32 %v4858_v27, %v1954_v47  ;;  %v2128_v34 = vmul.f32 0.1, %v2064_v30  ;;  %vm2096_vm4 = vcmp.gt.f32.partialorder %v2064_v30, 0.0 }
 0x21e   : > { %v2162_v43 = vsel %vm2098_vm6, %v2066_v36, %v2130_v6 }
 0x21f   : > { %v2131_v37 = vmul.f32 0.1, %v2067_v53  ;;  %vm2099_vm3 = vcmp.gt.f32.partialorder %v2067_v53, 0.0  ;;  %v2065_v61 = vadd.f32 %v4865_v59, %v2026_v41  ;;  %v2160_v40 = vsel %vm2096_vm4, %v2064_v30, %v2128_v34 }
 0x221   : > { %vm2097_vm7 = vcmp.gt.f32.partialorder %v2065_v61, 0.0  ;;  %v2129_v48 = vmul.f32 0.1, %v2065_v61  ;;  %v2163_v7 = vsel %vm2099_vm3, %v2067_v53, %v2131_v37 }
 0x222   : > { %v2183_v0 = vpack.c.bf16 %v2163_v7, %v2162_v43 }
 0x223   : > { %v2161_v42 = vsel %vm2097_vm7, %v2065_v61, %v2129_v48 }
 0x224   : > { %v2182_v49 = vpack.c.bf16 %v2161_v42, %v2160_v40 }
 0x226   : > { %2912 = vmatprep.mubr.msk.bf16.mxu1 %vm1517_vm5, %v2182_v49 }
 0x227   : > { %2913 = vmatmul.mubr.msk.bf16.gmra.mxu1 %vm1517_vm5, %v2183_v0 }
 0x236   : > { %v2884_v26 = vpop.f32.mrf.mxu0 }
 0x237   : > { %v2031_v39 = vmul.f32 %v2884_v26, %v4858_v27 }
 0x238   : > { %v1967_v10 = vpop.f32.mrf.mxu0 }
 0x239   : > { %v2029_v44 = vmul.f32 %v4858_v27, %v1967_v10  ;;  %v2070_v55 = vadd.f32 %v4865_v59, %v2031_v39 }
 0x23a   : > { %v2885_v22 = vpop.f32.mrf.mxu0 }
 0x23b   : > { %v2032_v19 = vmul.f32 %v2885_v22, %v4858_v27  ;;  %v2068_v16 = vadd.f32 %v4865_v59, %v2029_v44  ;;  %v2134_v62 = vmul.f32 0.1, %v2070_v55  ;;  %vm2102_vm10 = vcmp.gt.f32.partialorder %v2070_v55, 0.0 }
 0x23c   : > { %v1970_v63 = vpop.f32.mrf.mxu0 }
 0x23d   : > { %v2071_v4 = vadd.f32 %v4865_v59, %v2032_v19  ;;  %v2030_v35 = vmul.f32 %v4858_v27, %v1970_v63  ;;  %v2132_v60 = vmul.f32 0.1, %v2068_v16  ;;  %vm2100_vm9 = vcmp.gt.f32.partialorder %v2068_v16, 0.0 }
 0x23e   : > { %v2166_v12 = vsel %vm2102_vm10, %v2070_v55, %v2134_v62 }
 0x23f   : > { %v2135_v33 = vmul.f32 0.1, %v2071_v4  ;;  %vm2103_vm8 = vcmp.gt.f32.partialorder %v2071_v4, 0.0  ;;  %v2069_v17 = vadd.f32 %v4865_v59, %v2030_v35  ;;  %v2164_v2 = vsel %vm2100_vm9, %v2068_v16, %v2132_v60 }
 0x241   : > { %vm2101_vm11 = vcmp.gt.f32.partialorder %v2069_v17, 0.0  ;;  %v2133_v5 = vmul.f32 0.1, %v2069_v17  ;;  %v2167_v1 = vsel %vm2103_vm8, %v2071_v4, %v2135_v33 }
 0x242   : > { %v2185_v45 = vpack.c.bf16 %v2167_v1, %v2166_v12 }
 0x243   : > { %v2165_v38 = vsel %vm2101_vm11, %v2069_v17, %v2133_v5 }
 0x244   : > { %v2184_v32 = vpack.c.bf16 %v2165_v38, %v2164_v2 }
 0x246   : > { %2916 = vmatprep.mubr.msk.bf16.mxu1 %vm1517_vm5, %v2184_v32 }
 0x247   : > { %v2894_v15 = vpop.f32.mrf.mxu1  ;;  %2917 = vmatmul.mubr.msk.bf16.gmra.mxu1 %vm1517_vm5, %v2185_v45 }
 0x248   : > { %v2411_v25 = vmul.f32 %v2894_v15, %v4975_v29 }
 0x249   : > { %v2275_v8 = vpop.f32.mrf.mxu1 }
 0x24a   : > { %v2450_v3 = vadd.f32 %v4982_v9, %v2411_v25  ;;  %v2409_v24 = vmul.f32 %v4975_v29, %v2275_v8 }
 0x24b   : > { %v2895_v23 = vpop.f32.mrf.mxu1 }
 0x24c   : > { %vm2482_vm12 = vcmp.gt.f32.partialorder %v2450_v3, 0.0  ;;  %v2514_v54 = vmul.f32 0.1, %v2450_v3  ;;  %v2448_v11 = vadd.f32 %v4982_v9, %v2409_v24  ;;  %v2412_v13 = vmul.f32 %v2895_v23, %v4975_v29 }
 0x24d   : > { %v2278_v57 = vpop.f32.mrf.mxu1 }
 0x24e   : > { %v2546_v14 = vsel %vm2482_vm12, %v2450_v3, %v2514_v54  ;;  %vm2480_vm13 = vcmp.gt.f32.partialorder %v2448_v11, 0.0  ;;  %v2512_v28 = vmul.f32 0.1, %v2448_v11  ;;  %v2451_v31 = vadd.f32 %v4982_v9, %v2412_v13 }
 0x24f   : > { %2578 = vst [vmem:[%s4993_s9 + $0x10] sm:$0xff] %v2546_v14  ;;  %v2410_v51 = vmul.f32 %v4975_v29, %v2278_v57 }
 0x250   : > { %v2544_v50 = vsel %vm2480_vm13, %v2448_v11, %v2512_v28  ;;  %vm2483_vm14 = vcmp.gt.f32.partialorder %v2451_v31, 0.0  ;;  %v2515_v56 = vmul.f32 0.1, %v2451_v31 }
 0x251   : > { %2576 = vst [vmem:[%s4993_s9] sm:$0xff] %v2544_v50  ;;  %v2449_v18 = vadd.f32 %v4982_v9, %v2410_v51 }
 0x252   : > { %v2547_v46 = vsel %vm2483_vm14, %v2451_v31, %v2515_v56 }
 0x253   : > { %2579 = vst [vmem:[%s4993_s9 + $0x18] sm:$0xff] %v2547_v46  ;;  %vm2481_vm15 = vcmp.gt.f32.partialorder %v2449_v18, 0.0  ;;  %v2513_v58 = vmul.f32 0.1, %v2449_v18  ;;  %v2888_v52 = vpop.f32.mrf.mxu0 }
 0x254   : > { %v2035_v30 = vmul.f32 %v2888_v52, %v4858_v27 }
 0x255   : > { %v2545_v21 = vsel %vm2481_vm15, %v2449_v18, %v2513_v58  ;;  %v1983_v20 = vpop.f32.mrf.mxu0 }
 0x256   : > { %2577 = vst [vmem:[%s4993_s9 + $0x8] sm:$0xff] %v2545_v21  ;;  %v2033_v47 = vmul.f32 %v4858_v27, %v1983_v20  ;;  %v2074_v34 = vadd.f32 %v4865_v59, %v2035_v30 }
 0x257   : > { %v2889_v36 = vpop.f32.mrf.mxu0 }
 0x258   : > { %v2036_v53 = vmul.f32 %v2889_v36, %v4858_v27  ;;  %v2072_v41 = vadd.f32 %v4865_v59, %v2033_v47  ;;  %v2138_v42 = vmul.f32 0.1, %v2074_v34  ;;  %vm2106_vm2 = vcmp.gt.f32.partialorder %v2074_v34, 0.0 }
 0x259   : > { %v1986_v37 = vpop.f32.mrf.mxu0 }
 0x25a   : > { %v2075_v61 = vadd.f32 %v4865_v59, %v2036_v53  ;;  %v2034_v6 = vmul.f32 %v4858_v27, %v1986_v37  ;;  %v2136_v7 = vmul.f32 0.1, %v2072_v41  ;;  %vm2104_vm1 = vcmp.gt.f32.partialorder %v2072_v41, 0.0 }
 0x25b   : > { %v2170_v10 = vsel %vm2106_vm2, %v2074_v34, %v2138_v42 }
 0x25c   : > { %v2139_v48 = vmul.f32 0.1, %v2075_v61  ;;  %vm2107_vm0 = vcmp.gt.f32.partialorder %v2075_v61, 0.0  ;;  %v2073_v40 = vadd.f32 %v4865_v59, %v2034_v6  ;;  %v2168_v0 = vsel %vm2104_vm1, %v2072_v41, %v2136_v7 }
 0x25e   : > { %vm2105_vm3 = vcmp.gt.f32.partialorder %v2073_v40, 0.0  ;;  %v2137_v43 = vmul.f32 0.1, %v2073_v40  ;;  %v2171_v49 = vsel %vm2107_vm0, %v2075_v61, %v2139_v48 }
 0x25f   : > { %v2187_v44 = vpack.c.bf16 %v2171_v49, %v2170_v10 }
 0x260   : > { %v2169_v26 = vsel %vm2105_vm3, %v2073_v40, %v2137_v43 }
 0x261   : > { %v2186_v39 = vpack.c.bf16 %v2169_v26, %v2168_v0 }
 0x263   : > { %2920 = vmatprep.mubr.msk.bf16.mxu1 %vm1517_vm5, %v2186_v39 }
 0x264   : > { %2921 = vmatmul.mubr.msk.bf16.gmra.mxu1 %vm1517_vm5, %v2187_v44 }
 0x267   : > { %v2898_v27 = vpop.f32.mrf.mxu1 }
 0x268   : > { %v2415_v22 = vmul.f32 %v2898_v27, %v4975_v29 }
 0x269   : > { %v2291_v59 = vpop.f32.mrf.mxu1 }
 0x26a   : > { %v2454_v19 = vadd.f32 %v4982_v9, %v2415_v22  ;;  %v2413_v16 = vmul.f32 %v4975_v29, %v2291_v59 }
 0x26b   : > { %v2899_v63 = vpop.f32.mrf.mxu1 }
 0x26c   : > { %vm2486_vm4 = vcmp.gt.f32.partialorder %v2454_v19, 0.0  ;;  %v2518_v55 = vmul.f32 0.1, %v2454_v19  ;;  %v2452_v4 = vadd.f32 %v4982_v9, %v2413_v16  ;;  %v2416_v35 = vmul.f32 %v2899_v63, %v4975_v29 }
 0x26d   : > { %v2294_v33 = vpop.f32.mrf.mxu1 }
 0x26e   : > { %v2550_v60 = vsel %vm2486_vm4, %v2454_v19, %v2518_v55  ;;  %vm2484_vm5 = vcmp.gt.f32.partialorder %v2452_v4, 0.0  ;;  %v2516_v17 = vmul.f32 0.1, %v2452_v4  ;;  %v2455_v62 = vadd.f32 %v4982_v9, %v2416_v35 }
 0x26f   : > { %2582 = vst [vmem:[%s4993_s9 + $0x30] sm:$0xff] %v2550_v60  ;;  %v2414_v5 = vmul.f32 %v4975_v29, %v2294_v33 }
 0x270   : > { %v2548_v1 = vsel %vm2484_vm5, %v2452_v4, %v2516_v17  ;;  %vm2487_vm6 = vcmp.gt.f32.partialorder %v2455_v62, 0.0  ;;  %v2519_v2 = vmul.f32 0.1, %v2455_v62 }
 0x271   : > { %2580 = vst [vmem:[%s4993_s9 + $0x20] sm:$0xff] %v2548_v1  ;;  %v2453_v38 = vadd.f32 %v4982_v9, %v2414_v5 }
 0x272   : > { %v2551_v12 = vsel %vm2487_vm6, %v2455_v62, %v2519_v2 }
 0x273   : > { %2583 = vst [vmem:[%s4993_s9 + $0x38] sm:$0xff] %v2551_v12  ;;  %vm2485_vm7 = vcmp.gt.f32.partialorder %v2453_v38, 0.0  ;;  %v2517_v32 = vmul.f32 0.1, %v2453_v38 }
 0x275   : > { %v2549_v45 = vsel %vm2485_vm7, %v2453_v38, %v2517_v32 }
 0x276   : > { %2581 = vst [vmem:[%s4993_s9 + $0x28] sm:$0xff] %v2549_v45 }
 0x287   : > { %v2902_v15 = vpop.f32.mrf.mxu1 }
 0x288   : > { %v2419_v25 = vmul.f32 %v2902_v15, %v4975_v29 }
 0x289   : > { %v2307_v8 = vpop.f32.mrf.mxu1 }
 0x28a   : > { %v2458_v3 = vadd.f32 %v4982_v9, %v2419_v25  ;;  %v2417_v24 = vmul.f32 %v4975_v29, %v2307_v8 }
 0x28b   : > { %v2903_v23 = vpop.f32.mrf.mxu1 }
 0x28c   : > { %vm2490_vm8 = vcmp.gt.f32.partialorder %v2458_v3, 0.0  ;;  %v2522_v54 = vmul.f32 0.1, %v2458_v3  ;;  %v2456_v11 = vadd.f32 %v4982_v9, %v2417_v24  ;;  %v2420_v13 = vmul.f32 %v2903_v23, %v4975_v29 }
 0x28d   : > { %v2310_v57 = vpop.f32.mrf.mxu1 }
 0x28e   : > { %v2554_v14 = vsel %vm2490_vm8, %v2458_v3, %v2522_v54  ;;  %vm2488_vm9 = vcmp.gt.f32.partialorder %v2456_v11, 0.0  ;;  %v2520_v28 = vmul.f32 0.1, %v2456_v11  ;;  %v2459_v31 = vadd.f32 %v4982_v9, %v2420_v13 }
 0x28f   : > { %2586 = vst [vmem:[%s4993_s9 + $0x50] sm:$0xff] %v2554_v14  ;;  %v2418_v51 = vmul.f32 %v4975_v29, %v2310_v57 }
 0x290   : > { %v2552_v50 = vsel %vm2488_vm9, %v2456_v11, %v2520_v28  ;;  %vm2491_vm10 = vcmp.gt.f32.partialorder %v2459_v31, 0.0  ;;  %v2523_v56 = vmul.f32 0.1, %v2459_v31 }
 0x291   : > { %2584 = vst [vmem:[%s4993_s9 + $0x40] sm:$0xff] %v2552_v50  ;;  %v2457_v18 = vadd.f32 %v4982_v9, %v2418_v51 }
 0x292   : > { %v2555_v46 = vsel %vm2491_vm10, %v2459_v31, %v2523_v56 }
 0x293   : > { %2587 = vst [vmem:[%s4993_s9 + $0x58] sm:$0xff] %v2555_v46  ;;  %vm2489_vm11 = vcmp.gt.f32.partialorder %v2457_v18, 0.0  ;;  %v2521_v58 = vmul.f32 0.1, %v2457_v18 }
 0x295   : > { %v2553_v52 = vsel %vm2489_vm11, %v2457_v18, %v2521_v58 }
 0x296   : > { %2585 = vst [vmem:[%s4993_s9 + $0x48] sm:$0xff] %v2553_v52 }
 0x2a7   : > { %v2906_v21 = vpop.f32.mrf.mxu1 }
 0x2a8   : > { %v2423_v20 = vmul.f32 %v2906_v21, %v4975_v29 }
 0x2a9   : > { %v2323_v30 = vpop.f32.mrf.mxu1 }
 0x2aa   : > { %v2462_v47 = vadd.f32 %v4982_v9, %v2423_v20  ;;  %v2421_v36 = vmul.f32 %v4975_v29, %v2323_v30 }
 0x2ab   : > { %v2907_v53 = vpop.f32.mrf.mxu1 }
 0x2ac   : > { %vm2494_vm12 = vcmp.gt.f32.partialorder %v2462_v47, 0.0  ;;  %v2526_v41 = vmul.f32 0.1, %v2462_v47  ;;  %v2460_v37 = vadd.f32 %v4982_v9, %v2421_v36  ;;  %v2424_v34 = vmul.f32 %v2907_v53, %v4975_v29 }
 0x2ad   : > { %v2326_v61 = vpop.f32.mrf.mxu1 }
 0x2ae   : > { %v2558_v6 = vsel %vm2494_vm12, %v2462_v47, %v2526_v41  ;;  %vm2492_vm13 = vcmp.gt.f32.partialorder %v2460_v37, 0.0  ;;  %v2524_v48 = vmul.f32 0.1, %v2460_v37  ;;  %v2463_v7 = vadd.f32 %v4982_v9, %v2424_v34 }
 0x2af   : > { %2590 = vst [vmem:[%s4993_s9 + $0x70] sm:$0xff] %v2558_v6  ;;  %v2422_v40 = vmul.f32 %v4975_v29, %v2326_v61 }
 0x2b0   : > { %v2556_v42 = vsel %vm2492_vm13, %v2460_v37, %v2524_v48  ;;  %vm2495_vm14 = vcmp.gt.f32.partialorder %v2463_v7, 0.0  ;;  %v2527_v43 = vmul.f32 0.1, %v2463_v7 }
 0x2b1   : > { %2588 = vst [vmem:[%s4993_s9 + $0x60] sm:$0xff] %v2556_v42  ;;  %v2461_v49 = vadd.f32 %v4982_v9, %v2422_v40 }
 0x2b2   : > { %v2559_v0 = vsel %vm2495_vm14, %v2463_v7, %v2527_v43 }
 0x2b3   : > { %2591 = vst [vmem:[%s4993_s9 + $0x78] sm:$0xff] %v2559_v0  ;;  %vm2493_vm15 = vcmp.gt.f32.partialorder %v2461_v49, 0.0  ;;  %v2525_v26 = vmul.f32 0.1, %v2461_v49 }
 0x2b5   : > { %v2557_v10 = vsel %vm2493_vm15, %v2461_v49, %v2525_v26 }
 0x2b6   : > { %2589 = vst [vmem:[%s4993_s9 + $0x68] sm:$0xff] %v2557_v10 }
 0x2c7   : > { %v2910_v39 = vpop.f32.mrf.mxu1 }
 0x2c8   : > { %v2427_v44 = vmul.f32 %v2910_v39, %v4975_v29 }
 0x2c9   : > { %v2339_v27 = vpop.f32.mrf.mxu1 }
 0x2ca   : > { %v2466_v22 = vadd.f32 %v4982_v9, %v2427_v44  ;;  %v2425_v59 = vmul.f32 %v4975_v29, %v2339_v27 }
 0x2cb   : > { %v2911_v19 = vpop.f32.mrf.mxu1 }
 0x2cc   : > { %vm2498_vm0 = vcmp.gt.f32.partialorder %v2466_v22, 0.0  ;;  %v2530_v16 = vmul.f32 0.1, %v2466_v22  ;;  %v2464_v63 = vadd.f32 %v4982_v9, %v2425_v59  ;;  %v2428_v55 = vmul.f32 %v2911_v19, %v4975_v29 }
 0x2cd   : > { %v2342_v4 = vpop.f32.mrf.mxu1 }
 0x2ce   : > { %v2562_v35 = vsel %vm2498_vm0, %v2466_v22, %v2530_v16  ;;  %vm2496_vm1 = vcmp.gt.f32.partialorder %v2464_v63, 0.0  ;;  %v2528_v33 = vmul.f32 0.1, %v2464_v63  ;;  %v2467_v60 = vadd.f32 %v4982_v9, %v2428_v55 }
 0x2cf   : > { %2594 = vst [vmem:[%s4993_s9 + $0x90] sm:$0xff] %v2562_v35  ;;  %v2426_v17 = vmul.f32 %v4975_v29, %v2342_v4 }
 0x2d0   : > { %v2560_v62 = vsel %vm2496_vm1, %v2464_v63, %v2528_v33  ;;  %vm2499_vm2 = vcmp.gt.f32.partialorder %v2467_v60, 0.0  ;;  %v2531_v5 = vmul.f32 0.1, %v2467_v60 }
 0x2d1   : > { %2592 = vst [vmem:[%s4993_s9 + $0x80] sm:$0xff] %v2560_v62  ;;  %v2465_v1 = vadd.f32 %v4982_v9, %v2426_v17 }
 0x2d2   : > { %v2563_v2 = vsel %vm2499_vm2, %v2467_v60, %v2531_v5 }
 0x2d3   : > { %2595 = vst [vmem:[%s4993_s9 + $0x98] sm:$0xff] %v2563_v2  ;;  %vm2497_vm3 = vcmp.gt.f32.partialorder %v2465_v1, 0.0  ;;  %v2529_v38 = vmul.f32 0.1, %v2465_v1 }
 0x2d5   : > { %v2561_v12 = vsel %vm2497_vm3, %v2465_v1, %v2529_v38 }
 0x2d6   : > { %2593 = vst [vmem:[%s4993_s9 + $0x88] sm:$0xff] %v2561_v12 }
 0x2e7   : > { %v2914_v32 = vpop.f32.mrf.mxu1 }
 0x2e8   : > { %v2431_v45 = vmul.f32 %v2914_v32, %v4975_v29 }
 0x2e9   : > { %v2355_v15 = vpop.f32.mrf.mxu1 }
 0x2ea   : > { %v2470_v25 = vadd.f32 %v4982_v9, %v2431_v45  ;;  %v2429_v8 = vmul.f32 %v4975_v29, %v2355_v15 }
 0x2eb   : > { %v2915_v3 = vpop.f32.mrf.mxu1 }
 0x2ec   : > { %vm2502_vm4 = vcmp.gt.f32.partialorder %v2470_v25, 0.0  ;;  %v2534_v24 = vmul.f32 0.1, %v2470_v25  ;;  %v2468_v23 = vadd.f32 %v4982_v9, %v2429_v8  ;;  %v2432_v54 = vmul.f32 %v2915_v3, %v4975_v29 }
 0x2ed   : > { %v2358_v11 = vpop.f32.mrf.mxu1 }
 0x2ee   : > { %v2566_v13 = vsel %vm2502_vm4, %v2470_v25, %v2534_v24  ;;  %vm2500_vm5 = vcmp.gt.f32.partialorder %v2468_v23, 0.0  ;;  %v2532_v57 = vmul.f32 0.1, %v2468_v23  ;;  %v2471_v14 = vadd.f32 %v4982_v9, %v2432_v54 }
 0x2ef   : > { %2598 = vst [vmem:[%s4993_s9 + $0xb0] sm:$0xff] %v2566_v13  ;;  %v2430_v28 = vmul.f32 %v4975_v29, %v2358_v11 }
 0x2f0   : > { %v2564_v31 = vsel %vm2500_vm5, %v2468_v23, %v2532_v57  ;;  %vm2503_vm6 = vcmp.gt.f32.partialorder %v2471_v14, 0.0  ;;  %v2535_v51 = vmul.f32 0.1, %v2471_v14 }
 0x2f1   : > { %2596 = vst [vmem:[%s4993_s9 + $0xa0] sm:$0xff] %v2564_v31  ;;  %v2469_v50 = vadd.f32 %v4982_v9, %v2430_v28 }
 0x2f2   : > { %v2567_v56 = vsel %vm2503_vm6, %v2471_v14, %v2535_v51 }
 0x2f3   : > { %2599 = vst [vmem:[%s4993_s9 + $0xb8] sm:$0xff] %v2567_v56  ;;  %vm2501_vm7 = vcmp.gt.f32.partialorder %v2469_v50, 0.0  ;;  %v2533_v18 = vmul.f32 0.1, %v2469_v50 }
 0x2f5   : > { %v2565_v46 = vsel %vm2501_vm7, %v2469_v50, %v2533_v18 }
 0x2f6   : > { %2597 = vst [vmem:[%s4993_s9 + $0xa8] sm:$0xff] %v2565_v46 }
 0x307   : > { %v2918_v58 = vpop.f32.mrf.mxu1 }
 0x308   : > { %v2435_v52 = vmul.f32 %v2918_v58, %v4975_v29 }
 0x309   : > { %v2371_v21 = vpop.f32.mrf.mxu1 }
 0x30a   : > { %v2474_v20 = vadd.f32 %v4982_v9, %v2435_v52  ;;  %v2433_v30 = vmul.f32 %v4975_v29, %v2371_v21 }
 0x30b   : > { %v2919_v47 = vpop.f32.mrf.mxu1 }
 0x30c   : > { %vm2506_vm8 = vcmp.gt.f32.partialorder %v2474_v20, 0.0  ;;  %v2538_v36 = vmul.f32 0.1, %v2474_v20  ;;  %v2472_v53 = vadd.f32 %v4982_v9, %v2433_v30  ;;  %v2436_v41 = vmul.f32 %v2919_v47, %v4975_v29 }
 0x30d   : > { %v2374_v37 = vpop.f32.mrf.mxu1 }
 0x30e   : > { %v2570_v34 = vsel %vm2506_vm8, %v2474_v20, %v2538_v36  ;;  %vm2504_vm9 = vcmp.gt.f32.partialorder %v2472_v53, 0.0  ;;  %v2536_v61 = vmul.f32 0.1, %v2472_v53  ;;  %v2475_v6 = vadd.f32 %v4982_v9, %v2436_v41 }
 0x30f   : > { %2602 = vst [vmem:[%s4993_s9 + $0xd0] sm:$0xff] %v2570_v34  ;;  %v2434_v48 = vmul.f32 %v4975_v29, %v2374_v37 }
 0x310   : > { %v2568_v7 = vsel %vm2504_vm9, %v2472_v53, %v2536_v61  ;;  %vm2507_vm10 = vcmp.gt.f32.partialorder %v2475_v6, 0.0  ;;  %v2539_v40 = vmul.f32 0.1, %v2475_v6 }
 0x311   : > { %2600 = vst [vmem:[%s4993_s9 + $0xc0] sm:$0xff] %v2568_v7  ;;  %v2473_v42 = vadd.f32 %v4982_v9, %v2434_v48 }
 0x312   : > { %v2571_v43 = vsel %vm2507_vm10, %v2475_v6, %v2539_v40 }
 0x313   : > { %2603 = vst [vmem:[%s4993_s9 + $0xd8] sm:$0xff] %v2571_v43  ;;  %vm2505_vm11 = vcmp.gt.f32.partialorder %v2473_v42, 0.0  ;;  %v2537_v49 = vmul.f32 0.1, %v2473_v42 }
 0x315   : > { %v2569_v0 = vsel %vm2505_vm11, %v2473_v42, %v2537_v49 }
 0x316   : > { %2601 = vst [vmem:[%s4993_s9 + $0xc8] sm:$0xff] %v2569_v0 }
 0x324   : > { %v2922_v26 = vpop.f32.mrf.mxu1 }
 0x325   : > { %v2439_v10 = vmul.f32 %v2922_v26, %v4975_v29 }
 0x326   : > { %v2387_v39 = vpop.f32.mrf.mxu1 }
 0x327   : > { %v2478_v44 = vadd.f32 %v4982_v9, %v2439_v10  ;;  %v2437_v27 = vmul.f32 %v4975_v29, %v2387_v39 }
 0x328   : > { %v2923_v22 = vpop.f32.mrf.mxu1 }
 0x329   : > { %vm2510_vm12 = vcmp.gt.f32.partialorder %v2478_v44, 0.0  ;;  %v2542_v59 = vmul.f32 0.1, %v2478_v44  ;;  %v2476_v19 = vadd.f32 %v4982_v9, %v2437_v27  ;;  %v2440_v16 = vmul.f32 %v2923_v22, %v4975_v29 }
 0x32a   : > { %v2390_v63 = vpop.f32.mrf.mxu1 }
 0x32b   : > { %v2574_v55 = vsel %vm2510_vm12, %v2478_v44, %v2542_v59  ;;  %vm2508_vm13 = vcmp.gt.f32.partialorder %v2476_v19, 0.0  ;;  %v2540_v4 = vmul.f32 0.1, %v2476_v19  ;;  %v2479_v35 = vadd.f32 %v4982_v9, %v2440_v16 }
 0x32c   : > { %2606 = vst [vmem:[%s4993_s9 + $0xf0] sm:$0xff] %v2574_v55  ;;  %v2438_v33 = vmul.f32 %v4975_v29, %v2390_v63 }
 0x32d   : > { %v2572_v60 = vsel %vm2508_vm13, %v2476_v19, %v2540_v4  ;;  %vm2511_vm14 = vcmp.gt.f32.partialorder %v2479_v35, 0.0  ;;  %v2543_v17 = vmul.f32 0.1, %v2479_v35 }
 0x32e   : > { %2604 = vst [vmem:[%s4993_s9 + $0xe0] sm:$0xff] %v2572_v60  ;;  %v2477_v62 = vadd.f32 %v4982_v9, %v2438_v33 }
 0x32f   : > { %v2575_v5 = vsel %vm2511_vm14, %v2479_v35, %v2543_v17 }
 0x330   : > { %2607 = vst [vmem:[%s4993_s9 + $0xf8] sm:$0xff] %v2575_v5  ;;  %vm2509_vm15 = vcmp.gt.f32.partialorder %v2477_v62, 0.0  ;;  %v2541_v1 = vmul.f32 0.1, %v2477_v62 }
 0x332   : > { %v2573_v29 = vsel %vm2509_vm15, %v2477_v62, %v2541_v1 }
 0x333   : > { %2605 = vst [vmem:[%s4993_s9 + $0xe8] sm:$0xff] %v2573_v29 }
 0x334   : > { %3631 = shalt.err (!%p3628_p3)
}
 0x335   : > { %s3632_s13 = scalar_lea.hbm %s5099_s22, 4096  ;;  %s3636_s9 = scalar_lea.hbm %s5154_s7, 8192 }
 0x336   : > { %p3633_p4 = scmp.ne.s32.totalorder %s5099_s22, %s3632_s13  ;;  %p3637_p9 = scmp.lt.s32.totalorder %s5099_s22, %s5154_s7 }
 0x337   : > { %p3638_p10 = scmp.lt.s32.totalorder %s3636_s9, %s3632_s13 }
 0x338   : > { %p3634_p7 = pnand %p3633_p4, %p3769_p5 }
 0x339   : > { %p3639_p11 = por %p3638_p10, %p3637_p9 }
 0x33a   : > { %p3635_p8 = pneg %p3634_p7 }
 0x33c   : > { %p3640_p12 = pnand %p3639_p11, %p3635_p8 }
 0x33e   : > { %3643 = shalt.err (!%p3640_p12)
}
 0x33f   : > { %s3690_s21 = smov 128  }
 0x340   : > { %2926 = dma.vmem_to_hbm [thread:$0]  (%p3769_p5), %s5101_s19, 4096, %s5099_s22, %s5106_s28, %s3690_s21, %s3690_s21, %s3681_s18  }
 0x341 PF: > { %p2932_p13 = scmp.ge.s32.totalorder %s3678_s27, 2  ;;  %s2637_s23 = sand.u32 1, %s3666_s24  }
 0x342   : > { %s2638_s29 = scalar_lea.sflag [#allocation3], %s2637_s23 }
 0x343   : > { %p2929_p0 = pnand %p2932_p13, %p3773_p6 }
 0x345   : > { %p2930_p1 = pneg %p2929_p0 }
 0x347   : > { %3661 = dma.done.wait (%p2930_p1), %s2638_s29, 4096  }
 0x348   : > { %3663 = vsyncadd (%p2930_p1), %s2638_s29, 4294963200  ;;  %p17_p2 = scmp.ge.s32.totalorder %s3756_s30, 4   ;;  %s5165_s24 = smov %s3670_s25 }
 0x349   : > { %s5166_s25 = smov %s3674_s26  ;;  %s5167_s26 = smov %s3767_s10 }
 0x34a   : > { %s5168_s27 = smov %s3756_s30  ;;  %19 = sbr.rel (!%p17_p2) target bundleno = 3 (0x3), region = 83 }
 0x34f   :  { %2643 = vsyncpa [#allocation3], 1 }
 0x350   :  { %2645 = vsyncpa [#allocation3 + $0x1], 1 }

</bundles_post_ra>
